<compile_context>
chip_gen: v7x
topology: tpu7x:2x2x1
jax: 0.10.0
libtpu: 0.0.40
codegen_flags: <defaults>
</compile_context>

<pallas_src>
import jax
import jax.numpy as jnp
from jax.experimental import pallas as pl
from jax.experimental.pallas import tpu as pltpu


# ------------------------------ fused kernel --------------------------------

def _make_rdb_kernel(n_dense, growth, c0, H, W, nb):
    HW = H * W
    L = nb * HW                      # images packed on the lane axis
    taps = [(dy - 1, dx - 1) for dy in range(3) for dx in range(3)]
    f32 = jnp.float32

    def kernel(x_ref, masks_ref, *args):
        # args = (w_flat_0..n_dense-1, w1x1, out_ref, cache_ref)
        w_refs = args[:n_dense]
        w1_ref = args[n_dense]           # (c0, c_tot)
        out_ref = args[n_dense + 1]      # (1, c0, L)
        cache_ref = args[n_dense + 2]    # (9*c_pre, L) shifted-tap cache

        x = x_ref[0].astype(f32)             # (c0, L)
        masks = masks_ref[...].astype(f32)   # (9, L); center row is all-ones

        def store_shifted(rows, base, cpg):
            # Write the 9 shifted(+masked) copies of `rows` (cpg, L) to cache
            # rows [base, base + 9*cpg), tap-major / channel-minor, matching
            # the host-side weight column order.
            for t, (oy, ox) in enumerate(taps):
                off = oy * W + ox
                if off == 0:
                    r = rows                                   # center tap
                else:
                    r = pltpu.roll(rows, shift=(-off) % L, axis=1)
                    r = r * masks[t:t + 1, :]                  # zero invalid taps
                cache_ref[base + t * cpg: base + (t + 1) * cpg, :] = r

        # Group 0: the block's input channels, shifted+masked once.
        store_shifted(x, 0, c0)

        # Incremental 1x1 conv: contribution of the input channels.
        acc = jnp.dot(w1_ref[:, 0:c0], x, preferred_element_type=f32)  # (c0, L)

        # Dense layers: each 3x3 "same" conv + ReLU is ONE (growth, 9*cin) @
        # (9*cin, L) matmul reading the contiguous prefix of the cache.
        for layer in range(n_dense):
            cin = c0 + layer * growth
            stacked = cache_ref[0:9 * cin, :]                  # (9*cin, L)
            w = w_refs[layer][...].astype(f32)                 # (growth, 9*cin)
            y = jnp.maximum(
                jnp.dot(w, stacked, preferred_element_type=f32), 0.0)
            # 1x1 contribution of this group's output channels.
            acc = acc + jnp.dot(w1_ref[:, cin:cin + growth], y,
                                preferred_element_type=f32)
            # Cache this group's shifted taps for the next layers.
            if layer + 1 < n_dense:
                store_shifted(y, 9 * cin, growth)

        # Exact residual add (kept outside the matmul on purpose).
        out_ref[0] = (acc + x).astype(out_ref.dtype)

    return kernel


# -------------------------------- wrapper ------------------------------------

def rdb_forward_nchw(x_nchw, dense_weights_hwio, w_1x1_io, *, batch_blocks=1):
    """RDB forward.

    x: NCHW; 3x3 weights HWIO (3,3,cin,growth); 1x1 weight (c_tot, c0).
    `batch_blocks` images-groups per grid step (1 = single step; set to the
    number of TensorCores, e.g. 2 on v7x, to shard the batch).
    """
    N, C0, H, W = x_nchw.shape
    n_dense = len(dense_weights_hwio)
    growth = dense_weights_hwio[0].shape[-1]
    c_tot = C0 + n_dense * growth
    HW = H * W
    assert N % batch_blocks == 0
    nb = N // batch_blocks
    L = nb * HW

    # Pack images onto the lane axis: (batch_blocks, C0, nb*HW).
    x_packed = (x_nchw.reshape(batch_blocks, nb, C0, HW)
                .transpose(0, 2, 1, 3)
                .reshape(batch_blocks, C0, L))

    # Boundary-validity masks for the 9 flattened-roll taps, tiled per image.
    col = jnp.arange(HW, dtype=jnp.int32)
    h_idx, w_idx = col // W, col % W
    rows = []
    for dy in range(3):
        for dx in range(3):
            oy, ox = dy - 1, dx - 1
            valid = ((h_idx + oy >= 0) & (h_idx + oy < H) &
                     (w_idx + ox >= 0) & (w_idx + ox < W))
            rows.append(valid.astype(jnp.float32))
    masks = jnp.tile(jnp.stack(rows, axis=0), (1, nb))          # (9, L)

    # Flatten each HWIO 3x3 weight to (growth, 9*cin); columns ordered
    # (group -> tap -> channel) to match the cache row layout.
    group_sizes = [C0] + [growth] * n_dense
    w_flat = []
    for l, w in enumerate(dense_weights_hwio):                  # (3,3,cin,growth)
        blocks, start = [], 0
        for n_g in group_sizes[: l + 1]:
            wg = w[:, :, start:start + n_g, :]                  # (3,3,n_g,growth)
            wg = jnp.transpose(wg, (3, 0, 1, 2)).reshape(growth, 9 * n_g)
            blocks.append(wg)
            start += n_g
        w_flat.append(jnp.concatenate(blocks, axis=1))          # (growth, 9*cin)

    # 1x1 weight: (c_tot, C0) IO -> (C0, c_tot).
    w1 = jnp.transpose(w_1x1_io, (1, 0))

    c_pre = C0 + max(n_dense - 1, 0) * growth   # channels that need shifted taps
    kernel = _make_rdb_kernel(n_dense, growth, C0, H, W, nb)

    in_specs = [pl.BlockSpec((1, C0, L), lambda b: (b, 0, 0)),
                pl.BlockSpec((9, L), lambda b: (0, 0))]
    in_specs += [pl.BlockSpec(w.shape, lambda b: (0, 0)) for w in w_flat]
    in_specs += [pl.BlockSpec(w1.shape, lambda b: (0, 0))]

    out = pl.pallas_call(
        kernel,
        out_shape=jax.ShapeDtypeStruct((batch_blocks, C0, L), x_nchw.dtype),
        grid=(batch_blocks,),
        in_specs=in_specs,
        out_specs=pl.BlockSpec((1, C0, L), lambda b: (b, 0, 0)),
        scratch_shapes=[pltpu.VMEM((9 * c_pre, L), jnp.float32)],
        compiler_params=pltpu.CompilerParams(
            dimension_semantics=("parallel",)),
    )(x_packed, masks, *w_flat, w1)

    return (out.reshape(batch_blocks, C0, nb, HW)
            .transpose(0, 2, 1, 3)
            .reshape(N, C0, H, W))


# ------------------------ pure-JAX reference check ---------------------------

def _ref_rdb_nchw(x_nchw, dense_weights_hwio, w_1x1_io):
    x = jnp.transpose(x_nchw, (0, 2, 3, 1))            # NHWC
    dn = ('NHWC', 'HWIO', 'NHWC')
    feat = x
    for w in dense_weights_hwio:
        y = jax.lax.conv_general_dilated(feat, w, (1, 1), 'SAME',
                                         dimension_numbers=dn)
        y = jnp.maximum(y, 0.0)
        feat = jnp.concatenate([feat, y], axis=-1)     # torch.cat((x, out), 1)
    y = jax.lax.conv_general_dilated(feat, w_1x1_io[None, None, :, :], (1, 1),
                                     'SAME', dimension_numbers=dn)
    return jnp.transpose(y + x, (0, 3, 1, 2))


# --------------------------------- main ---------------------------------------

if __name__ == "__main__":
    # RDB(nChannels=4, nDenselayer=3, growthRate=4), input NCHW (2, 4, 16, 16)
    nChannels, nDenselayer, growthRate = 4, 3, 4
    N, H, W = 2, 16, 16

    key = jax.random.PRNGKey(0)
    key, kx = jax.random.split(key)
    x_nchw = jax.random.normal(kx, (N, nChannels, H, W), dtype=jnp.float32)

    # Deterministic parameter init (shapes match the PyTorch module, bias=False).
    dense_weights = []
    nCh = nChannels
    for _ in range(nDenselayer):
        key, kw = jax.random.split(key)
        w = 0.1 * jax.random.normal(kw, (3, 3, nCh, growthRate), dtype=jnp.float32)
        dense_weights.append(w)
        nCh += growthRate
    key, kw1 = jax.random.split(key)
    w_1x1 = 0.1 * jax.random.normal(kw1, (nCh, nChannels), dtype=jnp.float32)

    out = jax.jit(rdb_forward_nchw)(x_nchw, dense_weights, w_1x1)
    out = jax.block_until_ready(out)

    ref = _ref_rdb_nchw(x_nchw, dense_weights, w_1x1)
    assert out.shape == x_nchw.shape
    assert jnp.allclose(out, ref, atol=1e-4, rtol=1e-4), "mismatch vs reference"

    print("KERNEL_OK")
</pallas_src>

<mosaic_0001>
module attributes {stable_mosaic.version = 11 : i64} {
  func.func @kernel(%arg0: i32, %arg1: memref<1x4x512xf32, #tpu.memory_space<vmem>>, %arg2: memref<9x512xf32, #tpu.memory_space<vmem>>, %arg3: memref<4x36xf32, #tpu.memory_space<vmem>>, %arg4: memref<4x72xf32, #tpu.memory_space<vmem>>, %arg5: memref<4x108xf32, #tpu.memory_space<vmem>>, %arg6: memref<4x16xf32, #tpu.memory_space<vmem>>, %arg7: memref<1x4x512xf32, #tpu.memory_space<vmem>>, %arg8: memref<108x512xf32, #tpu.memory_space<vmem>>) attributes {dimension_semantics = [#tpu.dimension_semantics<parallel>], iteration_bounds = array<i64: 1>, scalar_prefetch = 0 : i64, scratch_operands = 1 : i64, tpu.core_type = #tpu.core_type<tc>, window_params = [{transform_indices = @transform_0, window_bounds = array<i64: 1, 4, 512>}, {pipeline_mode = #tpu.pipeline_mode<synchronous>, transform_indices = @transform_1, window_bounds = array<i64: 9, 512>}, {pipeline_mode = #tpu.pipeline_mode<synchronous>, transform_indices = @transform_2, window_bounds = array<i64: 4, 36>}, {pipeline_mode = #tpu.pipeline_mode<synchronous>, transform_indices = @transform_3, window_bounds = array<i64: 4, 72>}, {pipeline_mode = #tpu.pipeline_mode<synchronous>, transform_indices = @transform_4, window_bounds = array<i64: 4, 108>}, {pipeline_mode = #tpu.pipeline_mode<synchronous>, transform_indices = @transform_5, window_bounds = array<i64: 4, 16>}, {transform_indices = @transform_6, window_bounds = array<i64: 1, 4, 512>}]} {
    %c0 = arith.constant 0 : index
    %c0_0 = arith.constant 0 : index
    %c0_1 = arith.constant 0 : index
    %0 = vector.load %arg1[%c0, %c0_0, %c0_1] : memref<1x4x512xf32, #tpu.memory_space<vmem>>, vector<1x4x512xf32>
    %1 = vector.shape_cast %0 : vector<1x4x512xf32> to vector<4x512xf32>
    %c0_2 = arith.constant 0 : index
    %c0_3 = arith.constant 0 : index
    %2 = vector.load %arg2[%c0_2, %c0_3] : memref<9x512xf32, #tpu.memory_space<vmem>>, vector<9x512xf32>
    %c17_i32 = arith.constant 17 : i32
    %3 = tpu.dynamic_rotate %1 by %c17_i32 dim 1 : vector<4x512xf32>, i32 -> vector<4x512xf32>
    %4 = vector.extract_strided_slice %2 {offsets = [0, 0], sizes = [1, 512], strides = [1, 1]} : vector<9x512xf32> to vector<1x512xf32>
    %5 = vector.broadcast %4 : vector<1x512xf32> to vector<4x512xf32>
    %6 = arith.mulf %3, %5 : vector<4x512xf32>
    %c0_4 = arith.constant 0 : index
    %c0_5 = arith.constant 0 : index
    %7 = vector.load %arg8[%c0_4, %c0_5] : memref<108x512xf32, #tpu.memory_space<vmem>>, vector<4x512xf32>
    tpu.vector_store %arg8[%c0_4, %c0_5], %6 {strides = array<i32>} : memref<108x512xf32, #tpu.memory_space<vmem>>, vector<4x512xf32>,
    %c16_i32 = arith.constant 16 : i32
    %8 = tpu.dynamic_rotate %1 by %c16_i32 dim 1 : vector<4x512xf32>, i32 -> vector<4x512xf32>
    %9 = vector.extract_strided_slice %2 {offsets = [1, 0], sizes = [1, 512], strides = [1, 1]} : vector<9x512xf32> to vector<1x512xf32>
    %10 = vector.broadcast %9 : vector<1x512xf32> to vector<4x512xf32>
    %11 = arith.mulf %8, %10 : vector<4x512xf32>
    %c4 = arith.constant 4 : index
    %c0_6 = arith.constant 0 : index
    %12 = vector.load %arg8[%c4, %c0_6] : memref<108x512xf32, #tpu.memory_space<vmem>>, vector<4x512xf32>
    tpu.vector_store %arg8[%c4, %c0_6], %11 {strides = array<i32>} : memref<108x512xf32, #tpu.memory_space<vmem>>, vector<4x512xf32>,
    %c15_i32 = arith.constant 15 : i32
    %13 = tpu.dynamic_rotate %1 by %c15_i32 dim 1 : vector<4x512xf32>, i32 -> vector<4x512xf32>
    %14 = vector.extract_strided_slice %2 {offsets = [2, 0], sizes = [1, 512], strides = [1, 1]} : vector<9x512xf32> to vector<1x512xf32>
    %15 = vector.broadcast %14 : vector<1x512xf32> to vector<4x512xf32>
    %16 = arith.mulf %13, %15 : vector<4x512xf32>
    %c8 = arith.constant 8 : index
    %c0_7 = arith.constant 0 : index
    %17 = vector.load %arg8[%c8, %c0_7] : memref<108x512xf32, #tpu.memory_space<vmem>>, vector<4x512xf32>
    tpu.vector_store %arg8[%c8, %c0_7], %16 {strides = array<i32>} : memref<108x512xf32, #tpu.memory_space<vmem>>, vector<4x512xf32>,
    %c1_i32 = arith.constant 1 : i32
    %18 = tpu.dynamic_rotate %1 by %c1_i32 dim 1 : vector<4x512xf32>, i32 -> vector<4x512xf32>
    %19 = vector.extract_strided_slice %2 {offsets = [3, 0], sizes = [1, 512], strides = [1, 1]} : vector<9x512xf32> to vector<1x512xf32>
    %20 = vector.broadcast %19 : vector<1x512xf32> to vector<4x512xf32>
    %21 = arith.mulf %18, %20 : vector<4x512xf32>
    %c12 = arith.constant 12 : index
    %c0_8 = arith.constant 0 : index
    %22 = vector.load %arg8[%c12, %c0_8] : memref<108x512xf32, #tpu.memory_space<vmem>>, vector<4x512xf32>
    tpu.vector_store %arg8[%c12, %c0_8], %21 {strides = array<i32>} : memref<108x512xf32, #tpu.memory_space<vmem>>, vector<4x512xf32>,
    %c16 = arith.constant 16 : index
    %c0_9 = arith.constant 0 : index
    %23 = vector.load %arg8[%c16, %c0_9] : memref<108x512xf32, #tpu.memory_space<vmem>>, vector<4x512xf32>
    tpu.vector_store %arg8[%c16, %c0_9], %1 {strides = array<i32>} : memref<108x512xf32, #tpu.memory_space<vmem>>, vector<4x512xf32>,
    %c511_i32 = arith.constant 511 : i32
    %24 = tpu.dynamic_rotate %1 by %c511_i32 dim 1 : vector<4x512xf32>, i32 -> vector<4x512xf32>
    %25 = vector.extract_strided_slice %2 {offsets = [5, 0], sizes = [1, 512], strides = [1, 1]} : vector<9x512xf32> to vector<1x512xf32>
    %26 = vector.broadcast %25 : vector<1x512xf32> to vector<4x512xf32>
    %27 = arith.mulf %24, %26 : vector<4x512xf32>
    %c20 = arith.constant 20 : index
    %c0_10 = arith.constant 0 : index
    %28 = vector.load %arg8[%c20, %c0_10] : memref<108x512xf32, #tpu.memory_space<vmem>>, vector<4x512xf32>
    tpu.vector_store %arg8[%c20, %c0_10], %27 {strides = array<i32>} : memref<108x512xf32, #tpu.memory_space<vmem>>, vector<4x512xf32>,
    %c497_i32 = arith.constant 497 : i32
    %29 = tpu.dynamic_rotate %1 by %c497_i32 dim 1 : vector<4x512xf32>, i32 -> vector<4x512xf32>
    %30 = vector.extract_strided_slice %2 {offsets = [6, 0], sizes = [1, 512], strides = [1, 1]} : vector<9x512xf32> to vector<1x512xf32>
    %31 = vector.broadcast %30 : vector<1x512xf32> to vector<4x512xf32>
    %32 = arith.mulf %29, %31 : vector<4x512xf32>
    %c24 = arith.constant 24 : index
    %c0_11 = arith.constant 0 : index
    %33 = vector.load %arg8[%c24, %c0_11] : memref<108x512xf32, #tpu.memory_space<vmem>>, vector<4x512xf32>
    tpu.vector_store %arg8[%c24, %c0_11], %32 {strides = array<i32>} : memref<108x512xf32, #tpu.memory_space<vmem>>, vector<4x512xf32>,
    %c496_i32 = arith.constant 496 : i32
    %34 = tpu.dynamic_rotate %1 by %c496_i32 dim 1 : vector<4x512xf32>, i32 -> vector<4x512xf32>
    %35 = vector.extract_strided_slice %2 {offsets = [7, 0], sizes = [1, 512], strides = [1, 1]} : vector<9x512xf32> to vector<1x512xf32>
    %36 = vector.broadcast %35 : vector<1x512xf32> to vector<4x512xf32>
    %37 = arith.mulf %34, %36 : vector<4x512xf32>
    %c28 = arith.constant 28 : index
    %c0_12 = arith.constant 0 : index
    %38 = vector.load %arg8[%c28, %c0_12] : memref<108x512xf32, #tpu.memory_space<vmem>>, vector<4x512xf32>
    tpu.vector_store %arg8[%c28, %c0_12], %37 {strides = array<i32>} : memref<108x512xf32, #tpu.memory_space<vmem>>, vector<4x512xf32>,
    %c495_i32 = arith.constant 495 : i32
    %39 = tpu.dynamic_rotate %1 by %c495_i32 dim 1 : vector<4x512xf32>, i32 -> vector<4x512xf32>
    %40 = vector.extract_strided_slice %2 {offsets = [8, 0], sizes = [1, 512], strides = [1, 1]} : vector<9x512xf32> to vector<1x512xf32>
    %41 = vector.broadcast %40 : vector<1x512xf32> to vector<4x512xf32>
    %42 = arith.mulf %39, %41 : vector<4x512xf32>
    %c32 = arith.constant 32 : index
    %c0_13 = arith.constant 0 : index
    %43 = vector.load %arg8[%c32, %c0_13] : memref<108x512xf32, #tpu.memory_space<vmem>>, vector<4x512xf32>
    tpu.vector_store %arg8[%c32, %c0_13], %42 {strides = array<i32>} : memref<108x512xf32, #tpu.memory_space<vmem>>, vector<4x512xf32>,
    %c0_14 = arith.constant 0 : index
    %c0_15 = arith.constant 0 : index
    %44 = vector.load %arg6[%c0_14, %c0_15] : memref<4x16xf32, #tpu.memory_space<vmem>>, vector<4x4xf32>
    %cst = arith.constant dense<0.000000e+00> : vector<4x512xf32>
    %45 = tpu.matmul %44, %1, %cst {dimension_numbers = #tpu.dot_dimension_numbers<[1], [0], [0], [1], [0, 0, 1, 1], [], []>} : vector<4x4xf32>, vector<4x512xf32>, vector<4x512xf32> -> vector<4x512xf32>
    %c0_16 = arith.constant 0 : index
    %c0_17 = arith.constant 0 : index
    %46 = vector.load %arg8[%c0_16, %c0_17] : memref<108x512xf32, #tpu.memory_space<vmem>>, vector<36x512xf32>
    %c0_18 = arith.constant 0 : index
    %c0_19 = arith.constant 0 : index
    %47 = vector.load %arg3[%c0_18, %c0_19] : memref<4x36xf32, #tpu.memory_space<vmem>>, vector<4x36xf32>
    %cst_20 = arith.constant dense<0.000000e+00> : vector<4x512xf32>
    %48 = tpu.matmul %47, %46, %cst_20 {dimension_numbers = #tpu.dot_dimension_numbers<[1], [0], [0], [1], [0, 0, 1, 1], [], []>} : vector<4x36xf32>, vector<36x512xf32>, vector<4x512xf32> -> vector<4x512xf32>
    %cst_21 = arith.constant 0.000000e+00 : f32
    %49 = vector.broadcast %cst_21 : f32 to vector<4x512xf32>
    %50 = arith.maximumf %48, %49 : vector<4x512xf32>
    %c0_22 = arith.constant 0 : index
    %c4_23 = arith.constant 4 : index
    %51 = vector.load %arg6[%c0_22, %c4_23] : memref<4x16xf32, #tpu.memory_space<vmem>>, vector<4x4xf32>
    %cst_24 = arith.constant dense<0.000000e+00> : vector<4x512xf32>
    %52 = tpu.matmul %51, %50, %cst_24 {dimension_numbers = #tpu.dot_dimension_numbers<[1], [0], [0], [1], [0, 0, 1, 1], [], []>} : vector<4x4xf32>, vector<4x512xf32>, vector<4x512xf32> -> vector<4x512xf32>
    %53 = arith.addf %45, %52 : vector<4x512xf32>
    %c17_i32_25 = arith.constant 17 : i32
    %54 = tpu.dynamic_rotate %50 by %c17_i32_25 dim 1 : vector<4x512xf32>, i32 -> vector<4x512xf32>
    %55 = vector.extract_strided_slice %2 {offsets = [0, 0], sizes = [1, 512], strides = [1, 1]} : vector<9x512xf32> to vector<1x512xf32>
    %56 = vector.broadcast %55 : vector<1x512xf32> to vector<4x512xf32>
    %57 = arith.mulf %54, %56 : vector<4x512xf32>
    %c36 = arith.constant 36 : index
    %c0_26 = arith.constant 0 : index
    %58 = vector.load %arg8[%c36, %c0_26] : memref<108x512xf32, #tpu.memory_space<vmem>>, vector<4x512xf32>
    tpu.vector_store %arg8[%c36, %c0_26], %57 {strides = array<i32>} : memref<108x512xf32, #tpu.memory_space<vmem>>, vector<4x512xf32>,
    %c16_i32_27 = arith.constant 16 : i32
    %59 = tpu.dynamic_rotate %50 by %c16_i32_27 dim 1 : vector<4x512xf32>, i32 -> vector<4x512xf32>
    %60 = vector.extract_strided_slice %2 {offsets = [1, 0], sizes = [1, 512], strides = [1, 1]} : vector<9x512xf32> to vector<1x512xf32>
    %61 = vector.broadcast %60 : vector<1x512xf32> to vector<4x512xf32>
    %62 = arith.mulf %59, %61 : vector<4x512xf32>
    %c40 = arith.constant 40 : index
    %c0_28 = arith.constant 0 : index
    %63 = vector.load %arg8[%c40, %c0_28] : memref<108x512xf32, #tpu.memory_space<vmem>>, vector<4x512xf32>
    tpu.vector_store %arg8[%c40, %c0_28], %62 {strides = array<i32>} : memref<108x512xf32, #tpu.memory_space<vmem>>, vector<4x512xf32>,
    %c15_i32_29 = arith.constant 15 : i32
    %64 = tpu.dynamic_rotate %50 by %c15_i32_29 dim 1 : vector<4x512xf32>, i32 -> vector<4x512xf32>
    %65 = vector.extract_strided_slice %2 {offsets = [2, 0], sizes = [1, 512], strides = [1, 1]} : vector<9x512xf32> to vector<1x512xf32>
    %66 = vector.broadcast %65 : vector<1x512xf32> to vector<4x512xf32>
    %67 = arith.mulf %64, %66 : vector<4x512xf32>
    %c44 = arith.constant 44 : index
    %c0_30 = arith.constant 0 : index
    %68 = vector.load %arg8[%c44, %c0_30] : memref<108x512xf32, #tpu.memory_space<vmem>>, vector<4x512xf32>
    tpu.vector_store %arg8[%c44, %c0_30], %67 {strides = array<i32>} : memref<108x512xf32, #tpu.memory_space<vmem>>, vector<4x512xf32>,
    %c1_i32_31 = arith.constant 1 : i32
    %69 = tpu.dynamic_rotate %50 by %c1_i32_31 dim 1 : vector<4x512xf32>, i32 -> vector<4x512xf32>
    %70 = vector.extract_strided_slice %2 {offsets = [3, 0], sizes = [1, 512], strides = [1, 1]} : vector<9x512xf32> to vector<1x512xf32>
    %71 = vector.broadcast %70 : vector<1x512xf32> to vector<4x512xf32>
    %72 = arith.mulf %69, %71 : vector<4x512xf32>
    %c48 = arith.constant 48 : index
    %c0_32 = arith.constant 0 : index
    %73 = vector.load %arg8[%c48, %c0_32] : memref<108x512xf32, #tpu.memory_space<vmem>>, vector<4x512xf32>
    tpu.vector_store %arg8[%c48, %c0_32], %72 {strides = array<i32>} : memref<108x512xf32, #tpu.memory_space<vmem>>, vector<4x512xf32>,
    %c52 = arith.constant 52 : index
    %c0_33 = arith.constant 0 : index
    %74 = vector.load %arg8[%c52, %c0_33] : memref<108x512xf32, #tpu.memory_space<vmem>>, vector<4x512xf32>
    tpu.vector_store %arg8[%c52, %c0_33], %50 {strides = array<i32>} : memref<108x512xf32, #tpu.memory_space<vmem>>, vector<4x512xf32>,
    %c511_i32_34 = arith.constant 511 : i32
    %75 = tpu.dynamic_rotate %50 by %c511_i32_34 dim 1 : vector<4x512xf32>, i32 -> vector<4x512xf32>
    %76 = vector.extract_strided_slice %2 {offsets = [5, 0], sizes = [1, 512], strides = [1, 1]} : vector<9x512xf32> to vector<1x512xf32>
    %77 = vector.broadcast %76 : vector<1x512xf32> to vector<4x512xf32>
    %78 = arith.mulf %75, %77 : vector<4x512xf32>
    %c56 = arith.constant 56 : index
    %c0_35 = arith.constant 0 : index
    %79 = vector.load %arg8[%c56, %c0_35] : memref<108x512xf32, #tpu.memory_space<vmem>>, vector<4x512xf32>
    tpu.vector_store %arg8[%c56, %c0_35], %78 {strides = array<i32>} : memref<108x512xf32, #tpu.memory_space<vmem>>, vector<4x512xf32>,
    %c497_i32_36 = arith.constant 497 : i32
    %80 = tpu.dynamic_rotate %50 by %c497_i32_36 dim 1 : vector<4x512xf32>, i32 -> vector<4x512xf32>
    %81 = vector.extract_strided_slice %2 {offsets = [6, 0], sizes = [1, 512], strides = [1, 1]} : vector<9x512xf32> to vector<1x512xf32>
    %82 = vector.broadcast %81 : vector<1x512xf32> to vector<4x512xf32>
    %83 = arith.mulf %80, %82 : vector<4x512xf32>
    %c60 = arith.constant 60 : index
    %c0_37 = arith.constant 0 : index
    %84 = vector.load %arg8[%c60, %c0_37] : memref<108x512xf32, #tpu.memory_space<vmem>>, vector<4x512xf32>
    tpu.vector_store %arg8[%c60, %c0_37], %83 {strides = array<i32>} : memref<108x512xf32, #tpu.memory_space<vmem>>, vector<4x512xf32>,
    %c496_i32_38 = arith.constant 496 : i32
    %85 = tpu.dynamic_rotate %50 by %c496_i32_38 dim 1 : vector<4x512xf32>, i32 -> vector<4x512xf32>
    %86 = vector.extract_strided_slice %2 {offsets = [7, 0], sizes = [1, 512], strides = [1, 1]} : vector<9x512xf32> to vector<1x512xf32>
    %87 = vector.broadcast %86 : vector<1x512xf32> to vector<4x512xf32>
    %88 = arith.mulf %85, %87 : vector<4x512xf32>
    %c64 = arith.constant 64 : index
    %c0_39 = arith.constant 0 : index
    %89 = vector.load %arg8[%c64, %c0_39] : memref<108x512xf32, #tpu.memory_space<vmem>>, vector<4x512xf32>
    tpu.vector_store %arg8[%c64, %c0_39], %88 {strides = array<i32>} : memref<108x512xf32, #tpu.memory_space<vmem>>, vector<4x512xf32>,
    %c495_i32_40 = arith.constant 495 : i32
    %90 = tpu.dynamic_rotate %50 by %c495_i32_40 dim 1 : vector<4x512xf32>, i32 -> vector<4x512xf32>
    %91 = vector.extract_strided_slice %2 {offsets = [8, 0], sizes = [1, 512], strides = [1, 1]} : vector<9x512xf32> to vector<1x512xf32>
    %92 = vector.broadcast %91 : vector<1x512xf32> to vector<4x512xf32>
    %93 = arith.mulf %90, %92 : vector<4x512xf32>
    %c68 = arith.constant 68 : index
    %c0_41 = arith.constant 0 : index
    %94 = vector.load %arg8[%c68, %c0_41] : memref<108x512xf32, #tpu.memory_space<vmem>>, vector<4x512xf32>
    tpu.vector_store %arg8[%c68, %c0_41], %93 {strides = array<i32>} : memref<108x512xf32, #tpu.memory_space<vmem>>, vector<4x512xf32>,
    %c0_42 = arith.constant 0 : index
    %c0_43 = arith.constant 0 : index
    %95 = vector.load %arg8[%c0_42, %c0_43] : memref<108x512xf32, #tpu.memory_space<vmem>>, vector<72x512xf32>
    %c0_44 = arith.constant 0 : index
    %c0_45 = arith.constant 0 : index
    %96 = vector.load %arg4[%c0_44, %c0_45] : memref<4x72xf32, #tpu.memory_space<vmem>>, vector<4x72xf32>
    %cst_46 = arith.constant dense<0.000000e+00> : vector<4x512xf32>
    %97 = tpu.matmul %96, %95, %cst_46 {dimension_numbers = #tpu.dot_dimension_numbers<[1], [0], [0], [1], [0, 0, 1, 1], [], []>} : vector<4x72xf32>, vector<72x512xf32>, vector<4x512xf32> -> vector<4x512xf32>
    %cst_47 = arith.constant 0.000000e+00 : f32
    %98 = vector.broadcast %cst_47 : f32 to vector<4x512xf32>
    %99 = arith.maximumf %97, %98 : vector<4x512xf32>
    %c0_48 = arith.constant 0 : index
    %c8_49 = arith.constant 8 : index
    %100 = vector.load %arg6[%c0_48, %c8_49] : memref<4x16xf32, #tpu.memory_space<vmem>>, vector<4x4xf32>
    %cst_50 = arith.constant dense<0.000000e+00> : vector<4x512xf32>
    %101 = tpu.matmul %100, %99, %cst_50 {dimension_numbers = #tpu.dot_dimension_numbers<[1], [0], [0], [1], [0, 0, 1, 1], [], []>} : vector<4x4xf32>, vector<4x512xf32>, vector<4x512xf32> -> vector<4x512xf32>
    %102 = arith.addf %53, %101 : vector<4x512xf32>
    %c17_i32_51 = arith.constant 17 : i32
    %103 = tpu.dynamic_rotate %99 by %c17_i32_51 dim 1 : vector<4x512xf32>, i32 -> vector<4x512xf32>
    %104 = vector.extract_strided_slice %2 {offsets = [0, 0], sizes = [1, 512], strides = [1, 1]} : vector<9x512xf32> to vector<1x512xf32>
    %105 = vector.broadcast %104 : vector<1x512xf32> to vector<4x512xf32>
    %106 = arith.mulf %103, %105 : vector<4x512xf32>
    %c72 = arith.constant 72 : index
    %c0_52 = arith.constant 0 : index
    %107 = vector.load %arg8[%c72, %c0_52] : memref<108x512xf32, #tpu.memory_space<vmem>>, vector<4x512xf32>
    tpu.vector_store %arg8[%c72, %c0_52], %106 {strides = array<i32>} : memref<108x512xf32, #tpu.memory_space<vmem>>, vector<4x512xf32>,
    %c16_i32_53 = arith.constant 16 : i32
    %108 = tpu.dynamic_rotate %99 by %c16_i32_53 dim 1 : vector<4x512xf32>, i32 -> vector<4x512xf32>
    %109 = vector.extract_strided_slice %2 {offsets = [1, 0], sizes = [1, 512], strides = [1, 1]} : vector<9x512xf32> to vector<1x512xf32>
    %110 = vector.broadcast %109 : vector<1x512xf32> to vector<4x512xf32>
    %111 = arith.mulf %108, %110 : vector<4x512xf32>
    %c76 = arith.constant 76 : index
    %c0_54 = arith.constant 0 : index
    %112 = vector.load %arg8[%c76, %c0_54] : memref<108x512xf32, #tpu.memory_space<vmem>>, vector<4x512xf32>
    tpu.vector_store %arg8[%c76, %c0_54], %111 {strides = array<i32>} : memref<108x512xf32, #tpu.memory_space<vmem>>, vector<4x512xf32>,
    %c15_i32_55 = arith.constant 15 : i32
    %113 = tpu.dynamic_rotate %99 by %c15_i32_55 dim 1 : vector<4x512xf32>, i32 -> vector<4x512xf32>
    %114 = vector.extract_strided_slice %2 {offsets = [2, 0], sizes = [1, 512], strides = [1, 1]} : vector<9x512xf32> to vector<1x512xf32>
    %115 = vector.broadcast %114 : vector<1x512xf32> to vector<4x512xf32>
    %116 = arith.mulf %113, %115 : vector<4x512xf32>
    %c80 = arith.constant 80 : index
    %c0_56 = arith.constant 0 : index
    %117 = vector.load %arg8[%c80, %c0_56] : memref<108x512xf32, #tpu.memory_space<vmem>>, vector<4x512xf32>
    tpu.vector_store %arg8[%c80, %c0_56], %116 {strides = array<i32>} : memref<108x512xf32, #tpu.memory_space<vmem>>, vector<4x512xf32>,
    %c1_i32_57 = arith.constant 1 : i32
    %118 = tpu.dynamic_rotate %99 by %c1_i32_57 dim 1 : vector<4x512xf32>, i32 -> vector<4x512xf32>
    %119 = vector.extract_strided_slice %2 {offsets = [3, 0], sizes = [1, 512], strides = [1, 1]} : vector<9x512xf32> to vector<1x512xf32>
    %120 = vector.broadcast %119 : vector<1x512xf32> to vector<4x512xf32>
    %121 = arith.mulf %118, %120 : vector<4x512xf32>
    %c84 = arith.constant 84 : index
    %c0_58 = arith.constant 0 : index
    %122 = vector.load %arg8[%c84, %c0_58] : memref<108x512xf32, #tpu.memory_space<vmem>>, vector<4x512xf32>
    tpu.vector_store %arg8[%c84, %c0_58], %121 {strides = array<i32>} : memref<108x512xf32, #tpu.memory_space<vmem>>, vector<4x512xf32>,
    %c88 = arith.constant 88 : index
    %c0_59 = arith.constant 0 : index
    %123 = vector.load %arg8[%c88, %c0_59] : memref<108x512xf32, #tpu.memory_space<vmem>>, vector<4x512xf32>
    tpu.vector_store %arg8[%c88, %c0_59], %99 {strides = array<i32>} : memref<108x512xf32, #tpu.memory_space<vmem>>, vector<4x512xf32>,
    %c511_i32_60 = arith.constant 511 : i32
    %124 = tpu.dynamic_rotate %99 by %c511_i32_60 dim 1 : vector<4x512xf32>, i32 -> vector<4x512xf32>
    %125 = vector.extract_strided_slice %2 {offsets = [5, 0], sizes = [1, 512], strides = [1, 1]} : vector<9x512xf32> to vector<1x512xf32>
    %126 = vector.broadcast %125 : vector<1x512xf32> to vector<4x512xf32>
    %127 = arith.mulf %124, %126 : vector<4x512xf32>
    %c92 = arith.constant 92 : index
    %c0_61 = arith.constant 0 : index
    %128 = vector.load %arg8[%c92, %c0_61] : memref<108x512xf32, #tpu.memory_space<vmem>>, vector<4x512xf32>
    tpu.vector_store %arg8[%c92, %c0_61], %127 {strides = array<i32>} : memref<108x512xf32, #tpu.memory_space<vmem>>, vector<4x512xf32>,
    %c497_i32_62 = arith.constant 497 : i32
    %129 = tpu.dynamic_rotate %99 by %c497_i32_62 dim 1 : vector<4x512xf32>, i32 -> vector<4x512xf32>
    %130 = vector.extract_strided_slice %2 {offsets = [6, 0], sizes = [1, 512], strides = [1, 1]} : vector<9x512xf32> to vector<1x512xf32>
    %131 = vector.broadcast %130 : vector<1x512xf32> to vector<4x512xf32>
    %132 = arith.mulf %129, %131 : vector<4x512xf32>
    %c96 = arith.constant 96 : index
    %c0_63 = arith.constant 0 : index
    %133 = vector.load %arg8[%c96, %c0_63] : memref<108x512xf32, #tpu.memory_space<vmem>>, vector<4x512xf32>
    tpu.vector_store %arg8[%c96, %c0_63], %132 {strides = array<i32>} : memref<108x512xf32, #tpu.memory_space<vmem>>, vector<4x512xf32>,
    %c496_i32_64 = arith.constant 496 : i32
    %134 = tpu.dynamic_rotate %99 by %c496_i32_64 dim 1 : vector<4x512xf32>, i32 -> vector<4x512xf32>
    %135 = vector.extract_strided_slice %2 {offsets = [7, 0], sizes = [1, 512], strides = [1, 1]} : vector<9x512xf32> to vector<1x512xf32>
    %136 = vector.broadcast %135 : vector<1x512xf32> to vector<4x512xf32>
    %137 = arith.mulf %134, %136 : vector<4x512xf32>
    %c100 = arith.constant 100 : index
    %c0_65 = arith.constant 0 : index
    %138 = vector.load %arg8[%c100, %c0_65] : memref<108x512xf32, #tpu.memory_space<vmem>>, vector<4x512xf32>
    tpu.vector_store %arg8[%c100, %c0_65], %137 {strides = array<i32>} : memref<108x512xf32, #tpu.memory_space<vmem>>, vector<4x512xf32>,
    %c495_i32_66 = arith.constant 495 : i32
    %139 = tpu.dynamic_rotate %99 by %c495_i32_66 dim 1 : vector<4x512xf32>, i32 -> vector<4x512xf32>
    %140 = vector.extract_strided_slice %2 {offsets = [8, 0], sizes = [1, 512], strides = [1, 1]} : vector<9x512xf32> to vector<1x512xf32>
    %141 = vector.broadcast %140 : vector<1x512xf32> to vector<4x512xf32>
    %142 = arith.mulf %139, %141 : vector<4x512xf32>
    %c104 = arith.constant 104 : index
    %c0_67 = arith.constant 0 : index
    %143 = vector.load %arg8[%c104, %c0_67] : memref<108x512xf32, #tpu.memory_space<vmem>>, vector<4x512xf32>
    tpu.vector_store %arg8[%c104, %c0_67], %142 {strides = array<i32>} : memref<108x512xf32, #tpu.memory_space<vmem>>, vector<4x512xf32>,
    %c0_68 = arith.constant 0 : index
    %c0_69 = arith.constant 0 : index
    %144 = vector.load %arg8[%c0_68, %c0_69] : memref<108x512xf32, #tpu.memory_space<vmem>>, vector<108x512xf32>
    %c0_70 = arith.constant 0 : index
    %c0_71 = arith.constant 0 : index
    %145 = vector.load %arg5[%c0_70, %c0_71] : memref<4x108xf32, #tpu.memory_space<vmem>>, vector<4x108xf32>
    %cst_72 = arith.constant dense<0.000000e+00> : vector<4x512xf32>
    %146 = tpu.matmul %145, %144, %cst_72 {dimension_numbers = #tpu.dot_dimension_numbers<[1], [0], [0], [1], [0, 0, 1, 1], [], []>} : vector<4x108xf32>, vector<108x512xf32>, vector<4x512xf32> -> vector<4x512xf32>
    %cst_73 = arith.constant 0.000000e+00 : f32
    %147 = vector.broadcast %cst_73 : f32 to vector<4x512xf32>
    %148 = arith.maximumf %146, %147 : vector<4x512xf32>
    %c0_74 = arith.constant 0 : index
    %c12_75 = arith.constant 12 : index
    %149 = vector.load %arg6[%c0_74, %c12_75] : memref<4x16xf32, #tpu.memory_space<vmem>>, vector<4x4xf32>
    %cst_76 = arith.constant dense<0.000000e+00> : vector<4x512xf32>
    %150 = tpu.matmul %149, %148, %cst_76 {dimension_numbers = #tpu.dot_dimension_numbers<[1], [0], [0], [1], [0, 0, 1, 1], [], []>} : vector<4x4xf32>, vector<4x512xf32>, vector<4x512xf32> -> vector<4x512xf32>
    %151 = arith.addf %102, %150 : vector<4x512xf32>
    %152 = arith.addf %151, %1 : vector<4x512xf32>
    %c0_77 = arith.constant 0 : index
    %c0_78 = arith.constant 0 : index
    %c0_79 = arith.constant 0 : index
    %153 = vector.load %arg7[%c0_77, %c0_78, %c0_79] : memref<1x4x512xf32, #tpu.memory_space<vmem>>, vector<1x4x512xf32>
    %154 = vector.shape_cast %153 : vector<1x4x512xf32> to vector<4x512xf32>
    %155 = vector.shape_cast %152 : vector<4x512xf32> to vector<1x4x512xf32>
    tpu.vector_store %arg7[%c0_77, %c0_78, %c0_79], %155 {strides = array<i32>} : memref<1x4x512xf32, #tpu.memory_space<vmem>>, vector<1x4x512xf32>,
    return
  }
  func.func @transform_0(%arg0: i32) -> (i32, i32, i32) {
    %c0_i32 = arith.constant 0 : i32
    %c0_i32_0 = arith.constant 0 : i32
    %c0_i32_1 = arith.constant 0 : i32
    return %arg0, %c0_i32, %c0_i32_0 : i32, i32, i32
  }
  func.func @transform_1(%arg0: i32) -> (i32, i32) {
    %c0_i32 = arith.constant 0 : i32
    %c0_i32_0 = arith.constant 0 : i32
    %c0_i32_1 = arith.constant 0 : i32
    return %c0_i32, %c0_i32_0 : i32, i32
  }
  func.func @transform_2(%arg0: i32) -> (i32, i32) {
    %c0_i32 = arith.constant 0 : i32
    %c0_i32_0 = arith.constant 0 : i32
    %c0_i32_1 = arith.constant 0 : i32
    return %c0_i32, %c0_i32_0 : i32, i32
  }
  func.func @transform_3(%arg0: i32) -> (i32, i32) {
    %c0_i32 = arith.constant 0 : i32
    %c0_i32_0 = arith.constant 0 : i32
    %c0_i32_1 = arith.constant 0 : i32
    return %c0_i32, %c0_i32_0 : i32, i32
  }
  func.func @transform_4(%arg0: i32) -> (i32, i32) {
    %c0_i32 = arith.constant 0 : i32
    %c0_i32_0 = arith.constant 0 : i32
    %c0_i32_1 = arith.constant 0 : i32
    return %c0_i32, %c0_i32_0 : i32, i32
  }
  func.func @transform_5(%arg0: i32) -> (i32, i32) {
    %c0_i32 = arith.constant 0 : i32
    %c0_i32_0 = arith.constant 0 : i32
    %c0_i32_1 = arith.constant 0 : i32
    return %c0_i32, %c0_i32_0 : i32, i32
  }
  func.func @transform_6(%arg0: i32) -> (i32, i32, i32) {
    %c0_i32 = arith.constant 0 : i32
    %c0_i32_0 = arith.constant 0 : i32
    %c0_i32_1 = arith.constant 0 : i32
    return %arg0, %c0_i32, %c0_i32_0 : i32, i32, i32
  }
}

</mosaic_0001>

<bundles_post_ra>
// kernel: rdb_forward_nchw.1
= control target key start
LH: loop header
LB: loop body
LE: loop exit
PB: predicated region body
PF: predicated region fallthrough
CT: control target
= control target key end

     0   :  { %s2251_s25 = smov 16   ;;  %s2253_s26 = smov 17   ;;  %v3135_v4 = vmov 0.0   ;;  %v47_v6 = vlaneseq  ;;  %vm415_vm8 = vcmask 1043456   ;;  %vm411_vm9 = vcmask 293888   ;;  %s3128_s0 = inlined_call_operand.vmem [shape: f32[1,4,512], index: 0, kind: input, shape index: {}]   ;;  %s3129_s5 = inlined_call_operand.vmem [shape: f32[4,16], index: 5, kind: input, shape index: {}]   ;;  %s3130_s1 = inlined_call_operand.vmem [shape: f32[9,512], index: 1, kind: input, shape index: {}]   ;;  %s3131_s2 = inlined_call_operand.vmem [shape: f32[4,36], index: 2, kind: input, shape index: {}]   ;;  %s3132_s3 = inlined_call_operand.vmem [shape: f32[4,72], index: 3, kind: input, shape index: {}]   ;;  %s3133_s4 = inlined_call_operand.vmem [shape: f32[4,108], index: 4, kind: input, shape index: {}]   ;;  %s3134_s6 = inlined_call_operand.vmem [shape: f32[1,4,512], index: 6, kind: output, shape index: {}]  }
   0x1   :  { %v2302_v0 = vld [vmem:[%s3128_s0 + $0x8] sm:$0xff]  ;;  %v2307_v1 = vld [vmem:[%s3128_s0] sm:$0xff]  ;;  %s2252_s0 = smov 1   ;;  %s2254_s27 = smov 15   ;;  %492 = vmatprep.mubr.f32.mxu0 %v3135_v4  ;;  %563 = vmatprep.mubr.f32.mxu1 %v3135_v4  ;;  %v2406_v11 = vld [vmem:[%s3130_s1 + $0x18] sm:$0xff]  ;;  %vm577_vm10 = vcmask 31744  }
   0x2   :  { %3141 = vst [vmem:[#allocation3_spill] sm:$0xff] %v2302_v0  ;;  %3142 = vst [vmem:[#allocation4_spill] sm:$0xff] %v2307_v1  ;;  %82 = vrot.lane.b32.xlu1 %v2302_v0, %s2251_s25  ;;  %78 = vrot.lane.b32.xlu0 %v2307_v1, %s2251_s25  ;;  %v2317_v2 = vcombine.high %v2302_v0, %v2302_v0  ;;  %v2321_v3 = vcombine.high %v2307_v1, %v2307_v1  ;;  %s2255_s28 = smov 127   ;;  %s2256_s29 = smov 112   ;;  %v2390_v5 = vld [vmem:[%s3129_s5] sm:$0xf] }
   0x3   :  { %215 = vst [vmem:[#allocation2 + $0x50] sm:$0xf] %v2302_v0  ;;  %213 = vst [vmem:[#allocation2 + $0x40] sm:$0xf] %v2307_v1  ;;  %s2257_s30 = smov 113   ;;  %s2258_s7 = smov 111  }
   0x4   :  { %3143 = vst [vmem:[#allocation5_spill] sm:$0xff] %v2317_v2  ;;  %3144 = vst [vmem:[#allocation6_spill] sm:$0xff] %v2321_v3  ;;  %s2260_s10 = smov 124   ;;  %v2393_v7 = vshrl.u32 %v47_v6, 7  ;;  %v2395_v8 = vand.u32 127, %v47_v6  ;;  %v2400_v9 = vld [vmem:[%s3130_s1] sm:$0xff] }
   0x5   :  { %216 = vst [vmem:[#allocation2 + $0x58] sm:$0xf] %v2317_v2  ;;  %214 = vst [vmem:[#allocation2 + $0x48] sm:$0xf] %v2321_v3  ;;  %v2411_v12 = vld [vmem:[%s3130_s1 + $0x8] sm:$0xff]  ;;  %v2416_v13 = vld [vmem:[%s3130_s1 + $0x10] sm:$0xff] }
   0x6   :  { %84 = vrot.lane.b32.xlu1 %v2317_v2, %s2251_s25  ;;  %80 = vrot.lane.b32.xlu0 %v2321_v3, %s2251_s25  ;;  %v93_v10 = vsub.s32 1, %v2393_v7  ;;  %v179_v16 = vsub.s32 3, %v2393_v7  ;;  %vm86_vm0 = vcmp.lt.s32.totalorder %v2395_v8, 16  ;;  %vm172_vm1 = vcmp.lt.s32.totalorder %v2395_v8, 1  ;;  %s2261_s13 = smov 120  }
   0x7   :  { %v56_v39 = vsub.s32 0, %v2393_v7  ;;  %vm49_vm2 = vcmp.lt.s32.totalorder %v2395_v8, 17  ;;  %v142_v6 = vsub.s32 2, %v2393_v7  ;;  %vm135_vm3 = vcmp.lt.s32.totalorder %v2395_v8, 15 }
   0x8   :  { %v2421_v17 = vrot.slane %v2400_v9, %v93_v10  ;;  %v2424_v18 = vrot.slane %v2406_v11, %v93_v10  ;;  %v2427_v19 = vrot.slane %v2411_v12, %v93_v10  ;;  %v2430_v20 = vrot.slane %v2416_v13, %v93_v10 }
   0x9   :  { %v2434_v23 = vrot.slane %v2411_v12, %v179_v16  ;;  %v2453_v41 = vrot.slane %v2400_v9, %v179_v16  ;;  %v2456_v42 = vrot.slane %v2416_v13, %v179_v16  ;;  %v2459_v43 = vrot.slane %v2406_v11, %v179_v16 }
   0xa   :  { %166 = vrot.lane.b32.xlu1 %v2321_v3, %s2252_s0  ;;  %164 = vrot.lane.b32.xlu0 %v2307_v1, %s2252_s0  ;;  %v2472_v53 = vrot.slane %v2411_v12, %v56_v39  ;;  %v2477_v60 = vrot.slane %v2400_v9, %v56_v39  ;;  %v2481_v62 = vrot.slane %v2416_v13, %v56_v39  ;;  %vm225_vm4 = vcmp.lt.s32.totalorder %v2395_v8, 127 }
   0xb   :  { %v2484_v63 = vrot.slane %v2406_v11, %v56_v39  ;;  %vm311_vm5 = vcmp.lt.s32.totalorder %v2395_v8, 112  ;;  %vm274_vm6 = vcmp.lt.s32.totalorder %v2395_v8, 113  ;;  %vm360_vm7 = vcmp.lt.s32.totalorder %v2395_v8, 111 }
   0xc   :  { %vm1143_vm11 = vcmask 588800   ;;  %vm2263_vm12 = vmmov 1   ;;  %vm1726_vm14 = vcmask 883712  }
   0xd   :  { %vm3095_vm13 = vmpackc.low %vm415_vm8, %vm2263_vm12 }
   0xe   :  { %170 = vrot.lane.b32.xlu1 %v2317_v2, %s2252_s0  ;;  %168 = vrot.lane.b32.xlu0 %v2302_v0, %s2252_s0 }
  0x12   :  { %41 = vrot.lane.b32.xlu1 %v2321_v3, %s2253_s26  ;;  %39 = vrot.lane.b32.xlu0 %v2307_v1, %s2253_s26 }
  0x16   :  { %45 = vrot.lane.b32.xlu1 %v2317_v2, %s2253_s26  ;;  %43 = vrot.lane.b32.xlu0 %v2302_v0, %s2253_s26 }
  0x1a   :  { %129 = vrot.lane.b32.xlu1 %v2321_v3, %s2254_s27  ;;  %127 = vrot.lane.b32.xlu0 %v2307_v1, %s2254_s27 }
  0x1e   :  { %133 = vrot.lane.b32.xlu1 %v2317_v2, %s2254_s27  ;;  %131 = vrot.lane.b32.xlu0 %v2302_v0, %s2254_s27 }
  0x22   :  { %219 = vrot.lane.b32.xlu1 %v2321_v3, %s2255_s28  ;;  %217 = vrot.lane.b32.xlu0 %v2307_v1, %s2255_s28 }
  0x26   :  { %223 = vrot.lane.b32.xlu1 %v2317_v2, %s2255_s28  ;;  %221 = vrot.lane.b32.xlu0 %v2302_v0, %s2255_s28 }
  0x2a   :  { %305 = vrot.lane.b32.xlu1 %v2321_v3, %s2256_s29  ;;  %303 = vrot.lane.b32.xlu0 %v2307_v1, %s2256_s29 }
  0x2e   :  { %309 = vrot.lane.b32.xlu1 %v2317_v2, %s2256_s29  ;;  %307 = vrot.lane.b32.xlu0 %v2302_v0, %s2256_s29 }
  0x32   :  { %268 = vrot.lane.b32.xlu1 %v2321_v3, %s2257_s30  ;;  %266 = vrot.lane.b32.xlu0 %v2307_v1, %s2257_s30 }
  0x36   :  { %272 = vrot.lane.b32.xlu1 %v2317_v2, %s2257_s30  ;;  %270 = vrot.lane.b32.xlu0 %v2302_v0, %s2257_s30 }
  0x3a   :  { %354 = vrot.lane.b32.xlu1 %v2321_v3, %s2258_s7  ;;  %352 = vrot.lane.b32.xlu0 %v2307_v1, %s2258_s7 }
  0x3e   :  { %358 = vrot.lane.b32.xlu1 %v2317_v2, %s2258_s7  ;;  %356 = vrot.lane.b32.xlu0 %v2302_v0, %s2258_s7 }
  0x42   :  { %575 = vrot.lane.b32.xlu0 %v2390_v5, %s2260_s10 }
  0x74   :  { %v83_v14 = vpop.permute.xlu1 %82  ;;  %v79_v15 = vpop.permute.xlu0 %78 }
  0x78   :  { %v85_v21 = vpop.permute.xlu1 %84  ;;  %v81_v22 = vpop.permute.xlu0 %80 }
  0x79   :  { %v87_v24 = vsel %vm86_vm0, %v83_v14, %v85_v21  ;;  %v90_v25 = vsel %vm86_vm0, %v85_v21, %v79_v15  ;;  %v88_v26 = vsel %vm86_vm0, %v81_v22, %v83_v14  ;;  %v89_v27 = vsel %vm86_vm0, %v79_v15, %v81_v22 }
  0x7a   :  { %v107_v28 = vmul.f32 %v2421_v17, %v90_v25  ;;  %v110_v29 = vmul.f32 %v2424_v18, %v87_v24  ;;  %v108_v30 = vmul.f32 %v2427_v19, %v89_v27  ;;  %v109_v31 = vmul.f32 %v2430_v20, %v88_v26 }
  0x7b   :  { %v2498_v26 = vrot.slane %v2411_v12, %v142_v6 }
  0x7c   :  { %v115_v32 = vrot.slane %v107_v28, 4  ;;  %v118_v33 = vrot.slane %v110_v29, 4  ;;  %v116_v34 = vrot.slane %v108_v30, 4  ;;  %v117_v35 = vrot.slane %v109_v31, 4  ;;  %v167_v36 = vpop.permute.xlu1 %166  ;;  %v165_v37 = vpop.permute.xlu0 %164 }
  0x7d   :  { %v175_v38 = vsel %vm172_vm1, %v165_v37, %v167_v36  ;;  %v2503_v30 = vrot.slane %v2400_v9, %v142_v6 }
  0x7e   :  { %123 = vst [vmem:[#allocation2] sm:$0xf0] %v115_v32  ;;  %126 = vst [vmem:[#allocation2 + $0x18] sm:$0xf0] %v118_v33  ;;  %v194_v40 = vmul.f32 %v2434_v23, %v175_v38  ;;  %v2507_v32 = vrot.slane %v2416_v13, %v142_v6  ;;  %v2510_v33 = vrot.slane %v2406_v11, %v142_v6 }
  0x7f   :  { %124 = vst [vmem:[#allocation2 + $0x8] sm:$0xf0] %v116_v34  ;;  %125 = vst [vmem:[#allocation2 + $0x10] sm:$0xf0] %v117_v35  ;;  %v232_v34 = vsub.s32 5, %v2393_v7 }
  0x80   :  { %v202_v44 = vrot.slane %v194_v40, 4  ;;  %v171_v45 = vpop.permute.xlu1 %170  ;;  %v169_v46 = vpop.permute.xlu0 %168 }
  0x81   :  { %v176_v47 = vsel %vm172_vm1, %v171_v45, %v165_v37  ;;  %v173_v48 = vsel %vm172_vm1, %v169_v46, %v171_v45  ;;  %v174_v49 = vsel %vm172_vm1, %v167_v36, %v169_v46  ;;  %v2524_v46 = vrot.slane %v2400_v9, %v232_v34 }
  0x82   :  { %210 = vst [vmem:[#allocation2 + $0x28] sm:$0xf0] %v202_v44  ;;  %v193_v50 = vmul.f32 %v2453_v41, %v176_v47  ;;  %v195_v51 = vmul.f32 %v2456_v42, %v174_v49  ;;  %v196_v52 = vmul.f32 %v2459_v43, %v173_v48 }
  0x84   :  { %v201_v54 = vrot.slane %v193_v50, 4  ;;  %v203_v55 = vrot.slane %v195_v51, 4  ;;  %v204_v56 = vrot.slane %v196_v52, 4  ;;  %v42_v57 = vpop.permute.xlu1 %41  ;;  %v40_v58 = vpop.permute.xlu0 %39  ;;  %v2529_v50 = vrot.slane %v2406_v11, %v232_v34 }
  0x85   :  { %v52_v59 = vsel %vm49_vm2, %v40_v58, %v42_v57  ;;  %v2533_v52 = vrot.slane %v2411_v12, %v232_v34 }
  0x86   :  { %209 = vst [vmem:[#allocation2 + $0x20] sm:$0xf0] %v201_v54  ;;  %211 = vst [vmem:[#allocation2 + $0x30] sm:$0xf0] %v203_v55  ;;  %v71_v61 = vmul.f32 %v2472_v53, %v52_v59  ;;  %v2536_v54 = vrot.slane %v2416_v13, %v232_v34  ;;  %v318_v55 = vsub.s32 7, %v2393_v7 }
  0x87   :  { %212 = vst [vmem:[#allocation2 + $0x38] sm:$0xf0] %v204_v56 }
  0x88   :  { %75 = vst [vmem:[#allocation2 + $0x8] sm:$0xf] %v71_v61  ;;  %v46_v10 = vpop.permute.xlu1 %45  ;;  %v44_v14 = vpop.permute.xlu0 %43 }
  0x89   :  { %v53_v15 = vsel %vm49_vm2, %v46_v10, %v40_v58  ;;  %v50_v16 = vsel %vm49_vm2, %v44_v14, %v46_v10  ;;  %v51_v21 = vsel %vm49_vm2, %v42_v57, %v44_v14 }
  0x8a   :  { %v70_v22 = vmul.f32 %v2477_v60, %v53_v15  ;;  %v72_v24 = vmul.f32 %v2481_v62, %v51_v21  ;;  %v73_v25 = vmul.f32 %v2484_v63, %v50_v16 }
  0x8c   :  { %74 = vst [vmem:[#allocation2] sm:$0xf] %v70_v22  ;;  %76 = vst [vmem:[#allocation2 + $0x10] sm:$0xf] %v72_v24  ;;  %v130_v27 = vpop.permute.xlu1 %129  ;;  %v128_v28 = vpop.permute.xlu0 %127  ;;  %v2553_v24 = vrot.slane %v2400_v9, %v318_v55 }
  0x8d   :  { %77 = vst [vmem:[#allocation2 + $0x18] sm:$0xf] %v73_v25  ;;  %v138_v29 = vsel %vm135_vm3, %v128_v28, %v130_v27 }
  0x8e   :  { %v157_v31 = vmul.f32 %v2498_v26, %v138_v29 }
  0x8f   :  { %v391_v56 = vld [vmem:[#allocation2 + $0x8] sm:$0xff] }
  0x90   :  { %161 = vst [vmem:[#allocation2 + $0x28] sm:$0xf] %v157_v31  ;;  %v134_v35 = vpop.permute.xlu1 %133  ;;  %v132_v36 = vpop.permute.xlu0 %131 }
  0x91   :  { %v139_v37 = vsel %vm135_vm3, %v134_v35, %v128_v28  ;;  %v136_v38 = vsel %vm135_vm3, %v132_v36, %v134_v35  ;;  %v137_v39 = vsel %vm135_vm3, %v130_v27, %v132_v36 }
  0x92   :  { %v156_v40 = vmul.f32 %v2503_v30, %v139_v37  ;;  %v158_v44 = vmul.f32 %v2507_v32, %v137_v39  ;;  %v159_v45 = vmul.f32 %v2510_v33, %v136_v38 }
  0x93   :  { %v390_v25 = vld [vmem:[#allocation2] sm:$0xff] }
  0x94   :  { %160 = vst [vmem:[#allocation2 + $0x20] sm:$0xf] %v156_v40  ;;  %162 = vst [vmem:[#allocation2 + $0x30] sm:$0xf] %v158_v44  ;;  %v220_v47 = vpop.permute.xlu1 %219  ;;  %v218_v48 = vpop.permute.xlu0 %217  ;;  %v393_v39 = vld [vmem:[#allocation2 + $0x18] sm:$0xff]  ;;  %v392_v40 = vld [vmem:[#allocation2 + $0x10] sm:$0xff] }
  0x95   :  { %163 = vst [vmem:[#allocation2 + $0x38] sm:$0xf] %v159_v45  ;;  %v228_v49 = vsel %vm225_vm4, %v218_v48, %v220_v47 }
  0x96   :  { %v246_v51 = vmul.f32 %v2524_v46, %v228_v49 }
  0x97   :  { %v395_v57 = vld [vmem:[#allocation2 + $0x28] sm:$0xff] }
  0x98   :  { %v254_v58 = vrot.slane %v246_v51, 4  ;;  %v224_v59 = vpop.permute.xlu1 %223  ;;  %v222_v61 = vpop.permute.xlu0 %221  ;;  %v2539_v6 = vpack.c.bf16 %v395_v57, %v391_v56  ;;  %v2569_v51 = vrot.slane %v2411_v12, %v318_v55  ;;  %v2572_v56 = vrot.slane %v2416_v13, %v318_v55 }
  0x99   :  { %v229_v10 = vsel %vm225_vm4, %v224_v59, %v218_v48  ;;  %v226_v14 = vsel %vm225_vm4, %v222_v61, %v224_v59  ;;  %v227_v15 = vsel %vm225_vm4, %v220_v47, %v222_v61  ;;  %v2564_v48 = vrot.slane %v2406_v11, %v318_v55 }
  0x9a   :  { %262 = vst [vmem:[#allocation2 + $0x40] sm:$0xf0] %v254_v58  ;;  %v249_v16 = vmul.f32 %v2529_v50, %v229_v10  ;;  %v247_v21 = vmul.f32 %v2533_v52, %v227_v15  ;;  %v248_v22 = vmul.f32 %v2536_v54, %v226_v14  ;;  %2113 = vmatprep.subr.bf16.mxu0 %v2539_v6  ;;  %v281_v57 = vsub.s32 6, %v2393_v7 }
  0x9b   :  { %v394_v27 = vld [vmem:[#allocation2 + $0x20] sm:$0xff]  ;;  %v396_v29 = vld [vmem:[#allocation2 + $0x30] sm:$0xff] }
  0x9c   :  { %v397_v28 = vld [vmem:[#allocation2 + $0x38] sm:$0xff]  ;;  %v257_v31 = vrot.slane %v249_v16, 4  ;;  %v255_v34 = vrot.slane %v247_v21, 4  ;;  %v256_v35 = vrot.slane %v248_v22, 4  ;;  %v306_v36 = vpop.permute.xlu1 %305  ;;  %v304_v37 = vpop.permute.xlu0 %303  ;;  %v2555_v38 = vpack.c.bf16 %v394_v27, %v390_v25 }
  0x9d   :  { %v314_v44 = vsel %vm311_vm5, %v304_v37, %v306_v36  ;;  %v2559_v45 = vpack.c.bf16 %v397_v28, %v393_v39  ;;  %v2561_v47 = vpack.c.bf16 %v396_v29, %v392_v40  ;;  %v2588_v21 = vrot.slane %v2400_v9, %v281_v57 }
  0x9e   :  { %265 = vst [vmem:[#allocation2 + $0x58] sm:$0xf0] %v257_v31  ;;  %263 = vst [vmem:[#allocation2 + $0x48] sm:$0xf0] %v255_v34  ;;  %v332_v49 = vmul.f32 %v2553_v24, %v314_v44  ;;  %2115 = vmatpush1.bf16.msra.mxu0 %v2555_v38  ;;  %v2600_v9 = vrot.slane %v2416_v13, %v281_v57  ;;  %v2615_v13 = vld [vmem:[%s3130_s1 + $0x20] ss:$0 sm:$0xff] }
  0x9f   :  { %264 = vst [vmem:[#allocation2 + $0x50] sm:$0xf0] %v256_v35  ;;  %2121 = vmatprep.subr.bf16.mxu1 %v2559_v45  ;;  %v2594_v35 = vrot.slane %v2406_v11, %v281_v57 }
  0xa0   :  { %v340_v58 = vrot.slane %v332_v49, 4  ;;  %2123 = vmatpush1.bf16.msra.mxu1 %v2561_v47  ;;  %v310_v59 = vpop.permute.xlu1 %309  ;;  %v308_v61 = vpop.permute.xlu0 %307 }
  0xa1   :  { %v315_v10 = vsel %vm311_vm5, %v310_v59, %v304_v37  ;;  %v312_v14 = vsel %vm311_vm5, %v308_v61, %v310_v59  ;;  %v313_v15 = vsel %vm311_vm5, %v306_v36, %v308_v61  ;;  %v2597_v36 = vrot.slane %v2411_v12, %v281_v57 }
  0xa2   :  { %348 = vst [vmem:[#allocation2 + $0x60] sm:$0xf0] %v340_v58  ;;  %v335_v7 = vmul.f32 %v2564_v48, %v315_v10  ;;  %v333_v55 = vmul.f32 %v2569_v51, %v313_v15  ;;  %v334_v16 = vmul.f32 %v2572_v56, %v312_v14  ;;  %v2623_v14 = vld [vmem:[%s3130_s1 + $0x38] ss:$0 sm:$0xff]  ;;  %v2628_v15 = vld [vmem:[%s3130_s1 + $0x28] ss:$0 sm:$0xff] }
  0xa4   :  { %v343_v22 = vrot.slane %v335_v7, 4  ;;  %v341_v25 = vrot.slane %v333_v55, 4  ;;  %v342_v27 = vrot.slane %v334_v16, 4  ;;  %v269_v28 = vpop.permute.xlu1 %268  ;;  %v267_v29 = vpop.permute.xlu0 %266  ;;  %v2633_v7 = vld [vmem:[%s3130_s1 + $0x30] ss:$0 sm:$0xff] }
  0xa5   :  { %v277_v31 = vsel %vm274_vm6, %v267_v29, %v269_v28 }
  0xa6   :  { %351 = vst [vmem:[#allocation2 + $0x78] sm:$0xf0] %v343_v22  ;;  %349 = vst [vmem:[#allocation2 + $0x68] sm:$0xf0] %v341_v25  ;;  %v295_v34 = vmul.f32 %v2588_v21, %v277_v31 }
  0xa7   :  { %350 = vst [vmem:[#allocation2 + $0x70] sm:$0xf0] %v342_v27 }
  0xa8   :  { %299 = vst [vmem:[#allocation2 + $0x60] sm:$0xf] %v295_v34  ;;  %v273_v37 = vpop.permute.xlu1 %272  ;;  %v271_v39 = vpop.permute.xlu0 %270 }
  0xa9   :  { %v278_v40 = vsel %vm274_vm6, %v273_v37, %v267_v29  ;;  %v275_v44 = vsel %vm274_vm6, %v271_v39, %v273_v37  ;;  %v276_v49 = vsel %vm274_vm6, %v269_v28, %v271_v39  ;;  %v399_v28 = vld [vmem:[#allocation2 + $0x48] sm:$0xff]  ;;  %v401_v37 = vld [vmem:[#allocation2 + $0x58] sm:$0xff] }
  0xaa   :  { %v298_v11 = vmul.f32 %v2594_v35, %v278_v40  ;;  %v296_v12 = vmul.f32 %v2597_v36, %v276_v49  ;;  %v297_v58 = vmul.f32 %v2600_v9, %v275_v44  ;;  %v400_v40 = vld [vmem:[#allocation2 + $0x50] sm:$0xff] }
  0xac   :  { %302 = vst [vmem:[#allocation2 + $0x78] sm:$0xf] %v298_v11  ;;  %300 = vst [vmem:[#allocation2 + $0x68] sm:$0xf] %v296_v12  ;;  %v355_v57 = vpop.permute.xlu1 %354  ;;  %v353_v59 = vpop.permute.xlu0 %352 }
  0xad   :  { %301 = vst [vmem:[#allocation2 + $0x70] sm:$0xf] %v297_v58  ;;  %v363_v61 = vsel %vm360_vm7, %v353_v59, %v355_v57 }
  0xae   :  { %v381_v10 = vmul.f32 %v2615_v13, %v363_v61 }
  0xaf   :  { %v402_v39 = vld [vmem:[#allocation2 + $0x60] sm:$0xff] }
  0xb0   :  { %385 = vst [vmem:[#allocation2 + $0x80] sm:$0xf] %v381_v10  ;;  %v359_v55 = vpop.permute.xlu1 %358  ;;  %v357_v16 = vpop.permute.xlu0 %356  ;;  %v410_v10 = vld [vmem:[%s3131_s2] sm:$0xf] }
  0xb1   :  { %v364_v22 = vsel %vm360_vm7, %v359_v55, %v353_v59  ;;  %v361_v25 = vsel %vm360_vm7, %v357_v16, %v359_v55  ;;  %v362_v27 = vsel %vm360_vm7, %v355_v57, %v357_v16  ;;  %v398_v57 = vld [vmem:[#allocation2 + $0x40] sm:$0xff] }
  0xb2   :  { %v384_v29 = vmul.f32 %v2623_v14, %v364_v22  ;;  %v382_v31 = vmul.f32 %v2628_v15, %v362_v27  ;;  %v383_v34 = vmul.f32 %v2633_v7, %v361_v25  ;;  %v2650_v61 = vpack.c.bf16 %v402_v39, %v398_v57 }
  0xb3   :  { %v403_v44 = vld [vmem:[#allocation2 + $0x68] sm:$0xff]  ;;  %v405_v49 = vld [vmem:[#allocation2 + $0x78] sm:$0xff] }
  0xb4   :  { %v404_v11 = vld [vmem:[#allocation2 + $0x70] sm:$0xff]  ;;  %388 = vst [vmem:[#allocation2 + $0x98] sm:$0xf] %v384_v29  ;;  %386 = vst [vmem:[#allocation2 + $0x88] sm:$0xf] %v382_v31  ;;  %v2644_v12 = vpack.c.bf16 %v403_v44, %v399_v28  ;;  %v2646_v58 = vpack.c.bf16 %v405_v49, %v401_v37  ;;  %v576_v44 = vpop.permute.xlu0 %575 }
  0xb5   :  { %387 = vst [vmem:[#allocation2 + $0x90] sm:$0xf] %v383_v34  ;;  %v2648_v59 = vpack.c.bf16 %v404_v11, %v400_v40 }
  0xb6   :  { %2117 = vmatprep.subr.bf16.mxu0 %v2644_v12  ;;  %2125 = vmatprep.subr.bf16.mxu1 %v2646_v58 }
  0xb7   :  { %2119 = vmatpush1.bf16.msra.mxu0 %v2650_v61  ;;  %2127 = vmatpush1.bf16.msra.mxu1 %v2648_v59  ;;  %v406_v25 = vld [vmem:[#allocation2 + $0x80] sm:$0xf] }
  0xbb   :  { %v407_v55 = vld [vmem:[#allocation2 + $0x88] sm:$0xf]  ;;  %v409_v16 = vld [vmem:[#allocation2 + $0x98] sm:$0xf] }
  0xbc   :  { %v408_v22 = vld [vmem:[#allocation2 + $0x90] sm:$0xf]  ;;  %2074 = vmatprep.subr.msk.mxu0 %vm415_vm8, %v407_v55  ;;  %2077 = vmatprep.subr.msk.mxu1 %vm415_vm8, %v409_v16 }
  0xbd   :  { %2075 = vmatpush1.msk.msra.mxu0 %vm415_vm8, %v406_v25  ;;  %2078 = vmatpush1.msk.msra.mxu1 %vm415_vm8, %v408_v22 }
  0xbe   :  { %2076 = vmatmul.mubr.msk.f32.vlgmr.msra.gmra.mrb[0].mxu0 %vm411_vm9, %v410_v10  ;;  %2079 = vmatmul.mubr.msk.f32.vlgmr.msra.gmra.mrb[0].mxu1 %vm411_vm9, %v410_v10 }
  0xbf   :  { %727 = vmatprep.mubr.f32.mxu1 %v3135_v4  ;;  %656 = vmatprep.mubr.f32.mxu0 %v3135_v4 }
 0x191   :  { %v494_v27 = vpop.f32.mrb[0].mxu0  ;;  %v565_v28 = vpop.f32.mrb[0].mxu1 }
 0x192   :  { %v2665_v29 = vmax.f32 %v494_v27, 0.0  ;;  %v2667_v31 = vmax.f32 %v565_v28, 0.0  ;;  %v496_v34 = vpop.f32.mrb[1].mxu0  ;;  %v567_v37 = vpop.f32.mrb[1].mxu1 }
 0x193   :  { %v2669_v39 = vmax.f32 %v496_v34, 0.0  ;;  %v2671_v40 = vmax.f32 %v567_v37, 0.0 }
 0x194   :  { %886 = vrot.lane.b32.xlu1 %v2665_v29, %s2253_s26  ;;  %v990_v49 = vrot.slane %v2665_v29, 4  ;;  %v992_v11 = vrot.slane %v2667_v31, 4 }
 0x195   :  { %2083 = vmatprep.subr.msk.mxu1 %vm415_vm8, %v2671_v40  ;;  %888 = vrot.lane.b32.xlu0 %v2669_v39, %s2253_s26  ;;  %v991_v57 = vrot.slane %v2669_v39, 4  ;;  %v993_v10 = vrot.slane %v2671_v40, 4 }
 0x196   :  { %2080 = vmatprep.subr.msk.mxu0 %vm415_vm8, %v2669_v39  ;;  %2084 = vmatpush1.msk.msra.mxu1 %vm415_vm8, %v2667_v31  ;;  %998 = vst [vmem:[#allocation2 + $0xc0] sm:$0xf0] %v990_v49  ;;  %1000 = vst [vmem:[#allocation2 + $0xd0] sm:$0xf0] %v992_v11 }
 0x197   :  { %2081 = vmatpush1.msk.msra.mxu0 %vm415_vm8, %v2665_v29  ;;  %2085 = vmatmul.mubr.msk.f32.vlgmr.msra.gmra.mrb[2].mxu1 %vm577_vm10, %v576_v44  ;;  %999 = vst [vmem:[#allocation2 + $0xc8] sm:$0xf0] %v991_v57  ;;  %1001 = vst [vmem:[#allocation2 + $0xd8] sm:$0xf0] %v993_v10 }
 0x198   :  { %2082 = vmatmul.mubr.msk.f32.vlgmr.msra.gmra.mrb[2].mxu0 %vm577_vm10, %v576_v44  ;;  %2086 = vmatprep.subr.msk.mxu0 %vm415_vm8, %v2321_v3 }
 0x199   :  { %2089 = vmatprep.subr.msk.mxu1 %vm415_vm8, %v2317_v2  ;;  %890 = vrot.lane.b32.xlu1 %v2667_v31, %s2253_s26 }
 0x19a   :  { %2090 = vmatpush1.msk.msra.mxu1 %vm415_vm8, %v2302_v0  ;;  %2087 = vmatpush1.msk.msra.mxu0 %vm415_vm8, %v2307_v1 }
 0x19b   :  { %2145 = vmatprep.subr.bf16.mxu1 %v2559_v45  ;;  %892 = vrot.lane.b32.xlu0 %v2671_v40, %s2253_s26 }
 0x19c   :  { %2129 = vmatprep.subr.bf16.mxu0 %v2539_v6  ;;  %808 = vmatprep.mubr.f32.mxu0 %v3135_v4 }
 0x19d   :  { %938 = vrot.lane.b32.xlu1 %v2665_v29, %s2254_s27  ;;  %879 = vmatprep.mubr.f32.mxu1 %v3135_v4 }
 0x19f   :  { %940 = vrot.lane.b32.xlu0 %v2669_v39, %s2254_s27  ;;  %2091 = vmatmul.mubr.msk.f32.vlgmr.msra.gmra.mrb[2].mxu1 %vm577_vm10, %v2390_v5 }
 0x1a0   :  { %2088 = vmatmul.mubr.msk.f32.vlgmr.msra.gmra.mrb[2].mxu0 %vm577_vm10, %v2390_v5  ;;  %2147 = vmatpush1.bf16.msra.mxu1 %v2561_v47  ;;  %v1293_v5 = vld [vmem:[%s3129_s5] sm:$0xf] }
 0x1a1   :  { %2131 = vmatpush1.bf16.msra.mxu0 %v2555_v38  ;;  %2149 = vmatprep.subr.bf16.mxu1 %v2646_v58 }
 0x1a2   :  { %942 = vrot.lane.b32.xlu1 %v2667_v31, %s2254_s27  ;;  %2133 = vmatprep.subr.bf16.mxu0 %v2644_v12 }
 0x1a3   :  { %944 = vrot.lane.b32.xlu0 %v2671_v40, %s2254_s27  ;;  %1211 = vmatprep.mubr.f32.mxu0 %v3135_v4 }
 0x1a4   :  { %2151 = vmatpush1.bf16.msra.mxu1 %v2648_v59  ;;  %1282 = vmatprep.mubr.f32.mxu1 %v3135_v4 }
 0x1a5   :  { %2135 = vmatpush1.bf16.msra.mxu0 %v2650_v61 }
 0x1a6   :  { %918 = vrot.lane.b32.xlu1 %v2665_v29, %s2251_s25 }
 0x1a7   :  { %920 = vrot.lane.b32.xlu0 %v2669_v39, %s2251_s25 }
 0x1aa   :  { %922 = vrot.lane.b32.xlu1 %v2667_v31, %s2251_s25 }
 0x1ab   :  { %924 = vrot.lane.b32.xlu0 %v2671_v40, %s2251_s25 }
 0x1ae   :  { %1022 = vrot.lane.b32.xlu1 %v2665_v29, %s2257_s30 }
 0x1af   :  { %1024 = vrot.lane.b32.xlu0 %v2669_v39, %s2257_s30 }
 0x1b2   :  { %1026 = vrot.lane.b32.xlu1 %v2667_v31, %s2257_s30 }
 0x1b3   :  { %1028 = vrot.lane.b32.xlu0 %v2671_v40, %s2257_s30 }
 0x1b6   :  { %970 = vrot.lane.b32.xlu1 %v2665_v29, %s2252_s0 }
 0x1b7   :  { %972 = vrot.lane.b32.xlu0 %v2669_v39, %s2252_s0 }
 0x1ba   :  { %974 = vrot.lane.b32.xlu1 %v2667_v31, %s2252_s0 }
 0x1bb   :  { %976 = vrot.lane.b32.xlu0 %v2671_v40, %s2252_s0 }
 0x1be   :  { %1002 = vrot.lane.b32.xlu1 %v2665_v29, %s2255_s28 }
 0x1bf   :  { %1004 = vrot.lane.b32.xlu0 %v2669_v39, %s2255_s28 }
 0x1c2   :  { %1006 = vrot.lane.b32.xlu1 %v2667_v31, %s2255_s28 }
 0x1c3   :  { %1008 = vrot.lane.b32.xlu0 %v2671_v40, %s2255_s28 }
 0x1c6   :  { %1074 = vrot.lane.b32.xlu1 %v2665_v29, %s2258_s7 }
 0x1c7   :  { %1076 = vrot.lane.b32.xlu0 %v2669_v39, %s2258_s7 }
 0x1ca   :  { %1078 = vrot.lane.b32.xlu1 %v2667_v31, %s2258_s7 }
 0x1cb   :  { %1080 = vrot.lane.b32.xlu0 %v2671_v40, %s2258_s7 }
 0x1ce   :  { %1054 = vrot.lane.b32.xlu1 %v2665_v29, %s2256_s29 }
 0x1cf   :  { %1056 = vrot.lane.b32.xlu0 %v2669_v39, %s2256_s29 }
 0x1d2   :  { %1058 = vrot.lane.b32.xlu1 %v2667_v31, %s2256_s29 }
 0x1d3   :  { %1060 = vrot.lane.b32.xlu0 %v2671_v40, %s2256_s29 }
 0x1d6   :  { %1295 = vrot.lane.b32.xlu1 %v1293_v5, %s2261_s13 }
 0x206   :  { %v887_v55 = vpop.permute.xlu1 %886 }
 0x207   :  { %v889_v16 = vpop.permute.xlu0 %888 }
 0x208   :  { %v896_v22 = vsel %vm49_vm2, %v887_v55, %v889_v16 }
 0x209   :  { %v899_v25 = vmul.f32 %v896_v22, %v2472_v53 }
 0x20b   :  { %v907_v27 = vrot.slane %v899_v25, 4  ;;  %v891_v28 = vpop.permute.xlu1 %890 }
 0x20c   :  { %v895_v29 = vsel %vm49_vm2, %v889_v16, %v891_v28 }
 0x20d   :  { %915 = vst [vmem:[#allocation2 + $0x88] sm:$0xf0] %v907_v27  ;;  %v900_v31 = vmul.f32 %v895_v29, %v2481_v62  ;;  %v893_v34 = vpop.permute.xlu0 %892 }
 0x20e   :  { %v894_v37 = vsel %vm49_vm2, %v891_v28, %v893_v34  ;;  %v897_v39 = vsel %vm49_vm2, %v893_v34, %v887_v55 }
 0x20f   :  { %v908_v40 = vrot.slane %v900_v31, 4  ;;  %v898_v44 = vmul.f32 %v897_v39, %v2477_v60  ;;  %v901_v49 = vmul.f32 %v894_v37, %v2484_v63  ;;  %v939_v11 = vpop.permute.xlu1 %938 }
 0x211   :  { %916 = vst [vmem:[#allocation2 + $0x90] sm:$0xf0] %v908_v40  ;;  %v906_v57 = vrot.slane %v898_v44, 4  ;;  %v909_v10 = vrot.slane %v901_v49, 4  ;;  %v941_v5 = vpop.permute.xlu0 %940 }
 0x212   :  { %v948_v16 = vsel %vm135_vm3, %v939_v11, %v941_v5 }
 0x213   :  { %914 = vst [vmem:[#allocation2 + $0x80] sm:$0xf0] %v906_v57  ;;  %917 = vst [vmem:[#allocation2 + $0x98] sm:$0xf0] %v909_v10  ;;  %v951_v22 = vmul.f32 %v948_v16, %v2498_v26 }
 0x214   :  { %v943_v25 = vpop.permute.xlu1 %942 }
 0x215   :  { %v959_v27 = vrot.slane %v951_v22, 4  ;;  %v947_v55 = vsel %vm135_vm3, %v941_v5, %v943_v25  ;;  %v945_v28 = vpop.permute.xlu0 %944 }
 0x216   :  { %v952_v29 = vmul.f32 %v947_v55, %v2507_v32  ;;  %v946_v31 = vsel %vm135_vm3, %v943_v25, %v945_v28  ;;  %v949_v34 = vsel %vm135_vm3, %v945_v28, %v939_v11 }
 0x217   :  { %967 = vst [vmem:[#allocation2 + $0xa8] sm:$0xf0] %v959_v27  ;;  %v950_v37 = vmul.f32 %v949_v34, %v2503_v30  ;;  %v953_v39 = vmul.f32 %v946_v31, %v2510_v33 }
 0x218   :  { %v960_v40 = vrot.slane %v952_v29, 4  ;;  %v919_v44 = vpop.permute.xlu1 %918 }
 0x219   :  { %v958_v49 = vrot.slane %v950_v37, 4  ;;  %v961_v57 = vrot.slane %v953_v39, 4  ;;  %v921_v10 = vpop.permute.xlu0 %920 }
 0x21a   :  { %968 = vst [vmem:[#allocation2 + $0xb0] sm:$0xf0] %v960_v40  ;;  %v928_v5 = vsel %vm86_vm0, %v919_v44, %v921_v10 }
 0x21b   :  { %966 = vst [vmem:[#allocation2 + $0xa0] sm:$0xf0] %v958_v49  ;;  %969 = vst [vmem:[#allocation2 + $0xb8] sm:$0xf0] %v961_v57  ;;  %v931_v16 = vmul.f32 %v928_v5, %v2427_v19  ;;  %v1123_v57 = vld [vmem:[#allocation2 + $0x88] sm:$0xff] }
 0x21c   :  { %v923_v22 = vpop.permute.xlu1 %922 }
 0x21d   :  { %935 = vst [vmem:[#allocation2 + $0xa8] sm:$0xf] %v931_v16  ;;  %v927_v11 = vsel %vm86_vm0, %v921_v10, %v923_v22  ;;  %v925_v25 = vpop.permute.xlu0 %924 }
 0x21e   :  { %v932_v27 = vmul.f32 %v927_v11, %v2430_v20  ;;  %v926_v55 = vsel %vm86_vm0, %v923_v22, %v925_v25  ;;  %v929_v28 = vsel %vm86_vm0, %v925_v25, %v919_v44 }
 0x21f   :  { %v930_v29 = vmul.f32 %v929_v28, %v2421_v17  ;;  %v933_v31 = vmul.f32 %v926_v55, %v2424_v18 }
 0x220   :  { %936 = vst [vmem:[#allocation2 + $0xb0] sm:$0xf] %v932_v27  ;;  %v1023_v34 = vpop.permute.xlu1 %1022 }
 0x221   :  { %934 = vst [vmem:[#allocation2 + $0xa0] sm:$0xf] %v930_v29  ;;  %937 = vst [vmem:[#allocation2 + $0xb8] sm:$0xf] %v933_v31  ;;  %v1025_v37 = vpop.permute.xlu0 %1024  ;;  %v1122_v29 = vld [vmem:[#allocation2 + $0x80] sm:$0xff] }
 0x222   :  { %v1032_v39 = vsel %vm274_vm6, %v1023_v34, %v1025_v37 }
 0x223   :  { %v1034_v40 = vmul.f32 %v1032_v39, %v2588_v21 }
 0x224   :  { %v1027_v49 = vpop.permute.xlu1 %1026  ;;  %v1127_v10 = vld [vmem:[#allocation2 + $0xa8] sm:$0xff] }
 0x225   :  { %v1042_v5 = vrot.slane %v1034_v40, 4  ;;  %v1031_v44 = vsel %vm274_vm6, %v1025_v37, %v1027_v49  ;;  %v1029_v16 = vpop.permute.xlu0 %1028  ;;  %v2819_v22 = vpack.c.bf16 %v1127_v10, %v1123_v57  ;;  %v1125_v57 = vld [vmem:[#allocation2 + $0x98] sm:$0xff] }
 0x226   :  { %v1035_v11 = vmul.f32 %v1031_v44, %v2597_v36  ;;  %v1030_v25 = vsel %vm274_vm6, %v1027_v49, %v1029_v16  ;;  %v1033_v27 = vsel %vm274_vm6, %v1029_v16, %v1023_v34 }
 0x227   :  { %1050 = vst [vmem:[#allocation2 + $0xe0] sm:$0xf0] %v1042_v5  ;;  %v1036_v55 = vmul.f32 %v1030_v25, %v2600_v9  ;;  %v1037_v28 = vmul.f32 %v1033_v27, %v2594_v35  ;;  %2137 = vmatprep.subr.bf16.mxu0 %v2819_v22  ;;  %v1128_v31 = vld [vmem:[#allocation2 + $0xb0] sm:$0xff] }
 0x228   :  { %v1043_v37 = vrot.slane %v1035_v11, 4  ;;  %v971_v39 = vpop.permute.xlu1 %970  ;;  %v1126_v40 = vld [vmem:[#allocation2 + $0xa0] sm:$0xff]  ;;  %v1129_v10 = vld [vmem:[#allocation2 + $0xb8] sm:$0xff]  ;;  %v1124_v5 = vld [vmem:[#allocation2 + $0x90] sm:$0xff] }
 0x229   :  { %v1044_v44 = vrot.slane %v1036_v55, 4  ;;  %v1045_v4 = vrot.slane %v1037_v28, 4  ;;  %v973_v49 = vpop.permute.xlu0 %972  ;;  %v2829_v2 = vpack.c.bf16 %v1126_v40, %v1122_v29  ;;  %v2831_v34 = vpack.c.bf16 %v1129_v10, %v1125_v57 }
 0x22a   :  { %1051 = vst [vmem:[#allocation2 + $0xe8] sm:$0xf0] %v1043_v37  ;;  %v980_v16 = vsel %vm172_vm1, %v971_v39, %v973_v49  ;;  %v2835_v25 = vpack.c.bf16 %v1128_v31, %v1124_v5 }
 0x22b   :  { %1052 = vst [vmem:[#allocation2 + $0xf0] sm:$0xf0] %v1044_v44  ;;  %1053 = vst [vmem:[#allocation2 + $0xf8] sm:$0xf0] %v1045_v4  ;;  %v983_v11 = vmul.f32 %v980_v16, %v2434_v23  ;;  %2139 = vmatpush1.bf16.msra.mxu0 %v2829_v2  ;;  %2153 = vmatprep.subr.bf16.mxu1 %v2831_v34 }
 0x22c   :  { %v975_v27 = vpop.permute.xlu1 %974  ;;  %2155 = vmatpush1.bf16.msra.mxu1 %v2835_v25 }
 0x22d   :  { %987 = vst [vmem:[#allocation2 + $0xc8] sm:$0xf] %v983_v11  ;;  %v979_v55 = vsel %vm172_vm1, %v973_v49, %v975_v27  ;;  %v977_v28 = vpop.permute.xlu0 %976 }
 0x22e   :  { %v984_v29 = vmul.f32 %v979_v55, %v2456_v42  ;;  %v978_v31 = vsel %vm172_vm1, %v975_v27, %v977_v28  ;;  %v981_v4 = vsel %vm172_vm1, %v977_v28, %v971_v39 }
 0x22f   :  { %v982_v37 = vmul.f32 %v981_v4, %v2453_v41  ;;  %v985_v40 = vmul.f32 %v978_v31, %v2459_v43 }
 0x230   :  { %988 = vst [vmem:[#allocation2 + $0xd0] sm:$0xf] %v984_v29  ;;  %v1003_v57 = vpop.permute.xlu1 %1002 }
 0x231   :  { %986 = vst [vmem:[#allocation2 + $0xc0] sm:$0xf] %v982_v37  ;;  %989 = vst [vmem:[#allocation2 + $0xd8] sm:$0xf] %v985_v40  ;;  %v1005_v10 = vpop.permute.xlu0 %1004 }
 0x232   :  { %v1012_v44 = vsel %vm225_vm4, %v1003_v57, %v1005_v10 }
 0x233   :  { %v1014_v49 = vmul.f32 %v1012_v44, %v2524_v46 }
 0x234   :  { %v1007_v5 = vpop.permute.xlu1 %1006 }
 0x235   :  { %1018 = vst [vmem:[#allocation2 + $0xe0] sm:$0xf] %v1014_v49  ;;  %v1011_v16 = vsel %vm225_vm4, %v1005_v10, %v1007_v5  ;;  %v1009_v39 = vpop.permute.xlu0 %1008 }
 0x236   :  { %v1015_v11 = vmul.f32 %v1011_v16, %v2533_v52  ;;  %v1010_v27 = vsel %vm225_vm4, %v1007_v5, %v1009_v39  ;;  %v1013_v55 = vsel %vm225_vm4, %v1009_v39, %v1003_v57 }
 0x237   :  { %v1016_v28 = vmul.f32 %v1010_v27, %v2536_v54  ;;  %v1017_v29 = vmul.f32 %v1013_v55, %v2529_v50  ;;  %v1131_v27 = vld [vmem:[#allocation2 + $0xc8] sm:$0xff] }
 0x238   :  { %1019 = vst [vmem:[#allocation2 + $0xe8] sm:$0xf] %v1015_v11  ;;  %v1075_v31 = vpop.permute.xlu1 %1074 }
 0x239   :  { %1020 = vst [vmem:[#allocation2 + $0xf0] sm:$0xf] %v1016_v28  ;;  %1021 = vst [vmem:[#allocation2 + $0xf8] sm:$0xf] %v1017_v29  ;;  %v1077_v4 = vpop.permute.xlu0 %1076  ;;  %v1130_v29 = vld [vmem:[#allocation2 + $0xc0] sm:$0xff] }
 0x23a   :  { %v1084_v37 = vsel %vm360_vm7, %v1075_v31, %v1077_v4 }
 0x23b   :  { %v1086_v40 = vmul.f32 %v2615_v13, %v1084_v37  ;;  %v1132_v37 = vld [vmem:[#allocation2 + $0xd0] sm:$0xff] }
 0x23c   :  { %v1079_v10 = vpop.permute.xlu1 %1078  ;;  %v1134_v5 = vld [vmem:[#allocation2 + $0xe0] sm:$0xff] }
 0x23d   :  { %v1094_v44 = vrot.slane %v1086_v40, 4  ;;  %v1083_v49 = vsel %vm360_vm7, %v1077_v4, %v1079_v10  ;;  %v1081_v57 = vpop.permute.xlu0 %1080 }
 0x23e   :  { %v1087_v16 = vmul.f32 %v2628_v15, %v1083_v49  ;;  %v1082_v39 = vsel %vm360_vm7, %v1079_v10, %v1081_v57  ;;  %v1085_v11 = vsel %vm360_vm7, %v1081_v57, %v1075_v31  ;;  %v2876_v15 = vpack.c.bf16 %v1134_v5, %v1130_v29  ;;  %v1133_v49 = vld [vmem:[#allocation2 + $0xd8] sm:$0xff]  ;;  %v1142_v29 = vld [vmem:[%s3132_s3] sm:$0xf] }
 0x23f   :  { %1102 = vst [vmem:[#allocation2 + $0x100] sm:$0xf0] %v1094_v44  ;;  %v1088_v55 = vmul.f32 %v2633_v7, %v1082_v39  ;;  %v1089_v13 = vmul.f32 %v2623_v14, %v1085_v11  ;;  %v1135_v28 = vld [vmem:[#allocation2 + $0xe8] sm:$0xff] }
 0x240   :  { %v1095_v4 = vrot.slane %v1087_v16, 4  ;;  %v1055_v40 = vpop.permute.xlu1 %1054  ;;  %v2874_v0 = vpack.c.bf16 %v1135_v28, %v1131_v27  ;;  %v1137_v10 = vld [vmem:[#allocation2 + $0xf8] sm:$0xff]  ;;  %v1136_v3 = vld [vmem:[#allocation2 + $0xf0] sm:$0xff] }
 0x241   :  { %v1096_v1 = vrot.slane %v1088_v55, 4  ;;  %v1097_v31 = vrot.slane %v1089_v13, 4  ;;  %v1057_v57 = vpop.permute.xlu0 %1056  ;;  %v2878_v44 = vpack.c.bf16 %v1137_v10, %v1133_v49  ;;  %v2880_v7 = vpack.c.bf16 %v1136_v3, %v1132_v37 }
 0x242   :  { %1103 = vst [vmem:[#allocation2 + $0x108] sm:$0xf0] %v1095_v4  ;;  %v1064_v14 = vsel %vm311_vm5, %v1055_v40, %v1057_v57  ;;  %2141 = vmatprep.subr.bf16.mxu0 %v2874_v0  ;;  %v3145_v49 = vmov 0.0  }
 0x243   :  { %1104 = vst [vmem:[#allocation2 + $0x110] sm:$0xf0] %v1096_v1  ;;  %1105 = vst [vmem:[#allocation2 + $0x118] sm:$0xf0] %v1097_v31  ;;  %v1066_v5 = vmul.f32 %v1064_v14, %v2553_v24  ;;  %2143 = vmatpush1.bf16.msra.mxu0 %v2876_v15  ;;  %2157 = vmatprep.subr.bf16.mxu1 %v2878_v44 }
 0x244   :  { %v1059_v16 = vpop.permute.xlu1 %1058  ;;  %2159 = vmatpush1.bf16.msra.mxu1 %v2880_v7 }
 0x245   :  { %1070 = vst [vmem:[#allocation2 + $0x100] sm:$0xf] %v1066_v5  ;;  %v1063_v3 = vsel %vm311_vm5, %v1057_v57, %v1059_v16  ;;  %v1061_v39 = vpop.permute.xlu0 %1060 }
 0x246   :  { %v1067_v11 = vmul.f32 %v1063_v3, %v2569_v51  ;;  %v1062_v1 = vsel %vm311_vm5, %v1059_v16, %v1061_v39  ;;  %v1065_v27 = vsel %vm311_vm5, %v1061_v39, %v1055_v40 }
 0x247   :  { %v1068_v55 = vmul.f32 %v1062_v1, %v2572_v56  ;;  %v1069_v13 = vmul.f32 %v1065_v27, %v2564_v48 }
 0x248   :  { %1071 = vst [vmem:[#allocation2 + $0x108] sm:$0xf] %v1067_v11  ;;  %v1296_v11 = vpop.permute.xlu1 %1295 }
 0x249   :  { %1072 = vst [vmem:[#allocation2 + $0x110] sm:$0xf] %v1068_v55  ;;  %1073 = vst [vmem:[#allocation2 + $0x118] sm:$0xf] %v1069_v13 }
 0x24c   :  { %v2904_v37 = vld [vmem:[#allocation2 + $0x100] sm:$0xff] }
 0x24f   :  { %v2898_v28 = vld [vmem:[#allocation2 + $0x108] sm:$0xff] }
 0x250   :  { %1163 = vmatprep.subr.mxu0 %v2898_v28  ;;  %v2906_v4 = vld [vmem:[#allocation2 + $0x118] sm:$0xff]  ;;  %v2908_v40 = vld [vmem:[#allocation2 + $0x110] sm:$0xff] }
 0x251   :  { %1164 = vmatpush1.msra.mxu0 %v2904_v37  ;;  %1234 = vmatprep.subr.mxu1 %v2906_v4 }
 0x252   :  { %2092 = vmatmul.mubr.msk.f32.vlgmr.msra.gmra.mrb[4].mxu0 %vm1143_vm11, %v1142_v29  ;;  %1235 = vmatpush1.msra.mxu1 %v2908_v40 }
 0x253   :  { %2093 = vmatmul.mubr.msk.f32.vlgmr.msra.gmra.mrb[4].mxu1 %vm1143_vm11, %v1142_v29  ;;  %1375 = vmatprep.mubr.f32.mxu0 %v3145_v49 }
 0x254   :  { %1446 = vmatprep.mubr.f32.mxu1 %v3145_v49 }
 0x325   :  { %v1213_v10 = vpop.f32.mrb[4].mxu0 }
 0x326   :  { %v2915_v31 = vmax.f32 %v1213_v10, 0.0  ;;  %v1215_v57 = vpop.f32.mrb[5].mxu0  ;;  %v1284_v14 = vpop.f32.mrb[4].mxu1 }
 0x327   :  { %v1290_v5 = vmax.f32 %v1215_v57, 0.0  ;;  %v1291_v16 = vmax.f32 %v1284_v14, 0.0  ;;  %v1286_v3 = vpop.f32.mrb[5].mxu1 }
 0x328   :  { %1561 = vst [vmem:[#allocation2 + $0x160] sm:$0xf] %v2915_v31  ;;  %v1292_v39 = vmax.f32 %v1286_v3, 0.0  ;;  %1477 = vrot.lane.b32.xlu0 %v2915_v31, %s2251_s25 }
 0x329   :  { %1562 = vst [vmem:[#allocation2 + $0x168] sm:$0xf] %v1290_v5  ;;  %1563 = vst [vmem:[#allocation2 + $0x170] sm:$0xf] %v1291_v16  ;;  %1479 = vrot.lane.b32.xlu1 %v1290_v5, %s2251_s25  ;;  %2094 = vmatprep.subr.msk.mxu0 %vm415_vm8, %v1290_v5 }
 0x32a   :  { %1564 = vst [vmem:[#allocation2 + $0x178] sm:$0xf] %v1292_v39  ;;  %2095 = vmatpush1.msk.msra.mxu0 %vm415_vm8, %v2915_v31  ;;  %2097 = vmatprep.subr.msk.mxu1 %vm415_vm8, %v1292_v39 }
 0x32b   :  { %2098 = vmatpush1.msk.msra.mxu1 %vm415_vm8, %v1291_v16  ;;  %2161 = vmatprep.subr.bf16.mxu0 %v2539_v6 }
 0x32c   :  { %2191 = vmatprep.subr.bf16.mxu1 %v2559_v45  ;;  %1481 = vrot.lane.b32.xlu0 %v1291_v16, %s2251_s25 }
 0x32d   :  { %2096 = vmatmul.mubr.msk.f32.vlgmr.msra.gmra.mrb[2].mxu0 %vm577_vm10, %v1296_v11  ;;  %2099 = vmatmul.mubr.msk.f32.vlgmr.msra.gmra.mrb[2].mxu1 %vm577_vm10, %v1296_v11 }
 0x32e   :  { %2163 = vmatpush1.bf16.msra.mxu0 %v2555_v38  ;;  %2193 = vmatpush1.bf16.msra.mxu1 %v2561_v47 }
 0x32f   :  { %1483 = vrot.lane.b32.xlu1 %v1292_v39, %s2251_s25  ;;  %2165 = vmatprep.subr.bf16.mxu0 %v2644_v12 }
 0x330   :  { %2195 = vmatprep.subr.bf16.mxu1 %v2646_v58  ;;  %1457 = vrot.lane.b32.xlu0 %v2915_v31, %s2253_s26 }
 0x331   :  { %1806 = vmatprep.mubr.f32.mxu0 %v3145_v49  ;;  %1877 = vmatprep.mubr.f32.mxu1 %v3145_v49 }
 0x332   :  { %2167 = vmatpush1.bf16.msra.mxu0 %v2650_v61  ;;  %2197 = vmatpush1.bf16.msra.mxu1 %v2648_v59 }
 0x333   :  { %1459 = vrot.lane.b32.xlu1 %v1290_v5, %s2253_s26  ;;  %2169 = vmatprep.subr.bf16.mxu0 %v2819_v22 }
 0x334   :  { %2199 = vmatprep.subr.bf16.mxu1 %v2831_v34  ;;  %1461 = vrot.lane.b32.xlu0 %v1291_v16, %s2253_s26 }
 0x336   :  { %2171 = vmatpush1.bf16.msra.mxu0 %v2829_v2  ;;  %2201 = vmatpush1.bf16.msra.mxu1 %v2835_v25 }
 0x337   :  { %1463 = vrot.lane.b32.xlu1 %v1292_v39, %s2253_s26  ;;  %2173 = vmatprep.subr.bf16.mxu0 %v2874_v0  ;;  %v1888_v0 = vld [vmem:[%s3129_s5] sm:$0xf] }
 0x338   :  { %2203 = vmatprep.subr.bf16.mxu1 %v2878_v44  ;;  %1529 = vrot.lane.b32.xlu0 %v2915_v31, %s2252_s0 }
 0x33a   :  { %2175 = vmatpush1.bf16.msra.mxu0 %v2876_v15  ;;  %2205 = vmatpush1.bf16.msra.mxu1 %v2880_v7 }
 0x33b   :  { %1531 = vrot.lane.b32.xlu1 %v1290_v5, %s2252_s0 }
 0x33c   :  { %1533 = vrot.lane.b32.xlu0 %v1291_v16, %s2252_s0 }
 0x33f   :  { %1535 = vrot.lane.b32.xlu1 %v1292_v39, %s2252_s0  ;;  %s2262_s0 = smov 116  }
 0x340   :  { %1565 = vrot.lane.b32.xlu0 %v2915_v31, %s2255_s28 }
 0x343   :  { %1567 = vrot.lane.b32.xlu1 %v1290_v5, %s2255_s28 }
 0x344   :  { %1569 = vrot.lane.b32.xlu0 %v1291_v16, %s2255_s28 }
 0x347   :  { %1571 = vrot.lane.b32.xlu1 %v1292_v39, %s2255_s28 }
 0x348   :  { %1509 = vrot.lane.b32.xlu0 %v2915_v31, %s2254_s27 }
 0x34b   :  { %1511 = vrot.lane.b32.xlu1 %v1290_v5, %s2254_s27 }
 0x34c   :  { %1513 = vrot.lane.b32.xlu0 %v1291_v16, %s2254_s27 }
 0x34f   :  { %1515 = vrot.lane.b32.xlu1 %v1292_v39, %s2254_s27 }
 0x350   :  { %1617 = vrot.lane.b32.xlu0 %v2915_v31, %s2256_s29 }
 0x353   :  { %1619 = vrot.lane.b32.xlu1 %v1290_v5, %s2256_s29 }
 0x354   :  { %1621 = vrot.lane.b32.xlu0 %v1291_v16, %s2256_s29 }
 0x357   :  { %1623 = vrot.lane.b32.xlu1 %v1292_v39, %s2256_s29 }
 0x358   :  { %1597 = vrot.lane.b32.xlu0 %v2915_v31, %s2257_s30 }
 0x35b   :  { %1599 = vrot.lane.b32.xlu1 %v1290_v5, %s2257_s30 }
 0x35c   :  { %1601 = vrot.lane.b32.xlu0 %v1291_v16, %s2257_s30 }
 0x35f   :  { %1603 = vrot.lane.b32.xlu1 %v1292_v39, %s2257_s30 }
 0x360   :  { %1649 = vrot.lane.b32.xlu0 %v2915_v31, %s2258_s7 }
 0x363   :  { %1651 = vrot.lane.b32.xlu1 %v1290_v5, %s2258_s7 }
 0x364   :  { %1653 = vrot.lane.b32.xlu0 %v1291_v16, %s2258_s7 }
 0x367   :  { %1655 = vrot.lane.b32.xlu1 %v1292_v39, %s2258_s7 }
 0x368   :  { %1890 = vrot.lane.b32.xlu0 %v1888_v0, %s2262_s0 }
 0x39a   :  { %v1478_v2 = vpop.permute.xlu0 %1477 }
 0x39b   :  { %v1480_v6 = vpop.permute.xlu1 %1479 }
 0x39c   :  { %v1487_v38 = vsel %vm86_vm0, %v1478_v2, %v1480_v6 }
 0x39d   :  { %v1490_v45 = vmul.f32 %v1487_v38, %v2427_v19 }
 0x39e   :  { %v1482_v47 = vpop.permute.xlu0 %1481 }
 0x39f   :  { %v1498_v12 = vrot.slane %v1490_v45, 4  ;;  %v1486_v58 = vsel %vm86_vm0, %v1480_v6, %v1482_v47 }
 0x3a0   :  { %v1491_v59 = vmul.f32 %v1486_v58, %v2430_v20 }
 0x3a1   :  { %1506 = vst [vmem:[#allocation2 + $0x128] sm:$0xf0] %v1498_v12  ;;  %v1484_v61 = vpop.permute.xlu1 %1483 }
 0x3a2   :  { %v1499_v22 = vrot.slane %v1491_v59, 4  ;;  %v1485_v34 = vsel %vm86_vm0, %v1482_v47, %v1484_v61  ;;  %v1488_v25 = vsel %vm86_vm0, %v1484_v61, %v1478_v2  ;;  %v1458_v15 = vpop.permute.xlu0 %1457 }
 0x3a3   :  { %v1489_v44 = vmul.f32 %v1488_v25, %v2421_v17  ;;  %v1492_v19 = vmul.f32 %v1485_v34, %v2424_v18 }
 0x3a4   :  { %1507 = vst [vmem:[#allocation2 + $0x130] sm:$0xf0] %v1499_v22 }
 0x3a5   :  { %v1497_v7 = vrot.slane %v1489_v44, 4  ;;  %v1500_v1 = vrot.slane %v1492_v19, 4  ;;  %v1460_v27 = vpop.permute.xlu1 %1459 }
 0x3a6   :  { %v1467_v20 = vsel %vm49_vm2, %v1458_v15, %v1460_v27  ;;  %v1462_v55 = vpop.permute.xlu0 %1461 }
 0x3a7   :  { %1505 = vst [vmem:[#allocation2 + $0x120] sm:$0xf0] %v1497_v7  ;;  %1508 = vst [vmem:[#allocation2 + $0x138] sm:$0xf0] %v1500_v1  ;;  %v1470_v13 = vmul.f32 %v1467_v20, %v2472_v53  ;;  %v1466_v29 = vsel %vm49_vm2, %v1460_v27, %v1462_v55 }
 0x3a8   :  { %v1471_v10 = vmul.f32 %v1466_v29, %v2481_v62 }
 0x3a9   :  { %1474 = vst [vmem:[#allocation2 + $0x128] sm:$0xf] %v1470_v13  ;;  %v1464_v17 = vpop.permute.xlu1 %1463 }
 0x3aa   :  { %1475 = vst [vmem:[#allocation2 + $0x130] sm:$0xf] %v1471_v10  ;;  %v1465_v18 = vsel %vm49_vm2, %v1462_v55, %v1464_v17  ;;  %v1468_v31 = vsel %vm49_vm2, %v1464_v17, %v1458_v15  ;;  %v1530_v57 = vpop.permute.xlu0 %1529 }
 0x3ab   :  { %v1469_v14 = vmul.f32 %v1468_v31, %v2477_v60  ;;  %v1472_v5 = vmul.f32 %v1465_v18, %v2484_v63 }
 0x3ad   :  { %1473 = vst [vmem:[#allocation2 + $0x120] sm:$0xf] %v1469_v14  ;;  %1476 = vst [vmem:[#allocation2 + $0x138] sm:$0xf] %v1472_v5  ;;  %v1532_v53 = vpop.permute.xlu1 %1531 }
 0x3ae   :  { %v1539_v62 = vsel %vm172_vm1, %v1530_v57, %v1532_v53  ;;  %v1534_v16 = vpop.permute.xlu0 %1533 }
 0x3af   :  { %v1542_v3 = vmul.f32 %v1539_v62, %v2434_v23  ;;  %v1538_v39 = vsel %vm172_vm1, %v1532_v53, %v1534_v16 }
 0x3b0   :  { %v1543_v11 = vmul.f32 %v1538_v39, %v2456_v42  ;;  %v1706_v0 = vld [vmem:[#allocation2 + $0x128] sm:$0xff] }
 0x3b1   :  { %v1550_v2 = vrot.slane %v1542_v3, 4  ;;  %v1536_v6 = vpop.permute.xlu1 %1535  ;;  %v2176_v60 = vpack.c.bf16 %v1706_v0, %v2898_v28  ;;  %v1707_v42 = vld [vmem:[#allocation2 + $0x130] sm:$0xff] }
 0x3b2   :  { %v1551_v63 = vrot.slane %v1543_v11, 4  ;;  %v1537_v38 = vsel %vm172_vm1, %v1534_v16, %v1536_v6  ;;  %v1540_v45 = vsel %vm172_vm1, %v1536_v6, %v1530_v57  ;;  %v1566_v47 = vpop.permute.xlu0 %1565 }
 0x3b3   :  { %1558 = vst [vmem:[#allocation2 + $0x148] sm:$0xf0] %v1550_v2  ;;  %v1541_v23 = vmul.f32 %v1540_v45, %v2453_v41  ;;  %v1544_v12 = vmul.f32 %v1537_v38, %v2459_v43  ;;  %2177 = vmatprep.subr.bf16.mxu0 %v2176_v60  ;;  %v2208_v41 = vpack.c.bf16 %v1707_v42, %v2908_v40 }
 0x3b4   :  { %1559 = vst [vmem:[#allocation2 + $0x150] sm:$0xf0] %v1551_v63  ;;  %v1705_v58 = vld [vmem:[#allocation2 + $0x120] sm:$0xff]  ;;  %v1708_v59 = vld [vmem:[#allocation2 + $0x138] sm:$0xff] }
 0x3b5   :  { %v1549_v61 = vrot.slane %v1541_v23, 4  ;;  %v1552_v28 = vrot.slane %v1544_v12, 4  ;;  %v1568_v22 = vpop.permute.xlu1 %1567  ;;  %v2178_v34 = vpack.c.bf16 %v1705_v58, %v2904_v37  ;;  %v2206_v25 = vpack.c.bf16 %v1708_v59, %v2906_v4 }
 0x3b6   :  { %v1575_v15 = vsel %vm225_vm4, %v1566_v47, %v1568_v22  ;;  %v1570_v44 = vpop.permute.xlu0 %1569 }
 0x3b7   :  { %1557 = vst [vmem:[#allocation2 + $0x140] sm:$0xf0] %v1549_v61  ;;  %1560 = vst [vmem:[#allocation2 + $0x158] sm:$0xf0] %v1552_v28  ;;  %v1577_v43 = vmul.f32 %v1575_v15, %v2524_v46  ;;  %2179 = vmatpush1.bf16.msra.mxu0 %v2178_v34  ;;  %2207 = vmatprep.subr.bf16.mxu1 %v2206_v25  ;;  %v1574_v19 = vsel %vm225_vm4, %v1568_v22, %v1570_v44 }
 0x3b8   :  { %v1578_v7 = vmul.f32 %v1574_v19, %v2533_v52  ;;  %2209 = vmatpush1.bf16.msra.mxu1 %v2208_v41 }
 0x3b9   :  { %v1585_v37 = vrot.slane %v1577_v43, 4  ;;  %v1572_v4 = vpop.permute.xlu1 %1571 }
 0x3ba   :  { %v1586_v1 = vrot.slane %v1578_v7, 4  ;;  %v1573_v27 = vsel %vm225_vm4, %v1570_v44, %v1572_v4  ;;  %v1576_v40 = vsel %vm225_vm4, %v1572_v4, %v1566_v47  ;;  %v1510_v20 = vpop.permute.xlu0 %1509 }
 0x3bb   :  { %1593 = vst [vmem:[#allocation2 + $0x160] sm:$0xf0] %v1585_v37  ;;  %v1579_v46 = vmul.f32 %v1573_v27, %v2536_v54  ;;  %v1580_v55 = vmul.f32 %v1576_v40, %v2529_v50 }
 0x3bc   :  { %1594 = vst [vmem:[#allocation2 + $0x168] sm:$0xf0] %v1586_v1 }
 0x3bd   :  { %v1587_v13 = vrot.slane %v1579_v46, 4  ;;  %v1588_v29 = vrot.slane %v1580_v55, 4  ;;  %v1512_v52 = vpop.permute.xlu1 %1511 }
 0x3be   :  { %v1519_v10 = vsel %vm135_vm3, %v1510_v20, %v1512_v52  ;;  %v1514_v17 = vpop.permute.xlu0 %1513 }
 0x3bf   :  { %1595 = vst [vmem:[#allocation2 + $0x170] sm:$0xf0] %v1587_v13  ;;  %1596 = vst [vmem:[#allocation2 + $0x178] sm:$0xf0] %v1588_v29  ;;  %v1522_v18 = vmul.f32 %v1519_v10, %v2498_v26  ;;  %v1518_v31 = vsel %vm135_vm3, %v1512_v52, %v1514_v17  ;;  %v2249_v10 = vld [vmem:[%s3130_s1 + $0x30] ss:$0 sm:$0xff] }
 0x3c0   :  { %v1523_v57 = vmul.f32 %v1518_v31, %v2507_v32 }
 0x3c1   :  { %1526 = vst [vmem:[#allocation2 + $0x148] sm:$0xf] %v1522_v18  ;;  %v1516_v54 = vpop.permute.xlu1 %1515  ;;  %v2250_v18 = vld [vmem:[%s3130_s1 + $0x38] ss:$0 sm:$0xff] }
 0x3c2   :  { %1527 = vst [vmem:[#allocation2 + $0x150] sm:$0xf] %v1523_v57  ;;  %v1517_v50 = vsel %vm135_vm3, %v1514_v17, %v1516_v54  ;;  %v1520_v14 = vsel %vm135_vm3, %v1516_v54, %v1510_v20  ;;  %v1618_v5 = vpop.permute.xlu0 %1617  ;;  %v2247_v20 = vld [vmem:[%s3130_s1 + $0x20] ss:$0 sm:$0xff] }
 0x3c3   :  { %v1521_v53 = vmul.f32 %v1520_v14, %v2503_v30  ;;  %v1524_v62 = vmul.f32 %v1517_v50, %v2510_v33  ;;  %v1714_v2 = vld [vmem:[#allocation2 + $0x168] sm:$0xff] }
 0x3c5   :  { %1525 = vst [vmem:[#allocation2 + $0x140] sm:$0xf] %v1521_v53  ;;  %1528 = vst [vmem:[#allocation2 + $0x158] sm:$0xf] %v1524_v62  ;;  %v1620_v26 = vpop.permute.xlu1 %1619 }
 0x3c6   :  { %v1627_v32 = vsel %vm311_vm5, %v1618_v5, %v1620_v26  ;;  %v1622_v16 = vpop.permute.xlu0 %1621  ;;  %v1716_v58 = vld [vmem:[#allocation2 + $0x178] sm:$0xff]  ;;  %v1715_v25 = vld [vmem:[#allocation2 + $0x170] sm:$0xff] }
 0x3c7   :  { %v1629_v3 = vmul.f32 %v1627_v32, %v2553_v24  ;;  %v1626_v39 = vsel %vm311_vm5, %v1620_v26, %v1622_v16 }
 0x3c8   :  { %v1630_v11 = vmul.f32 %v1626_v39, %v2569_v51  ;;  %v1710_v0 = vld [vmem:[#allocation2 + $0x148] sm:$0xff]  ;;  %v1713_v51 = vld [vmem:[#allocation2 + $0x160] sm:$0xff] }
 0x3c9   :  { %v1637_v6 = vrot.slane %v1629_v3, 4  ;;  %v1624_v30 = vpop.permute.xlu1 %1623  ;;  %v2180_v60 = vpack.c.bf16 %v1714_v2, %v1710_v0  ;;  %v1711_v23 = vld [vmem:[#allocation2 + $0x150] sm:$0xff] }
 0x3ca   :  { %v1638_v33 = vrot.slane %v1630_v11, 4  ;;  %v1625_v63 = vsel %vm311_vm5, %v1622_v16, %v1624_v30  ;;  %v1628_v38 = vsel %vm311_vm5, %v1624_v30, %v1618_v5  ;;  %v1598_v45 = vpop.permute.xlu0 %1597  ;;  %v1725_v11 = vld [vmem:[%s3133_s4] sm:$0xf] }
 0x3cb   :  { %1645 = vst [vmem:[#allocation2 + $0x180] sm:$0xf0] %v1637_v6  ;;  %v1631_v24 = vmul.f32 %v1625_v63, %v2572_v56  ;;  %v1632_v47 = vmul.f32 %v1628_v38, %v2564_v48  ;;  %2181 = vmatprep.subr.bf16.mxu0 %v2180_v60  ;;  %v2212_v56 = vpack.c.bf16 %v1715_v25, %v1711_v23  ;;  %v3149_v23 = vld [vmem:[#allocation6_spill] sm:$0xff] }
 0x3cc   :  { %1646 = vst [vmem:[#allocation2 + $0x188] sm:$0xf0] %v1638_v33  ;;  %v1709_v12 = vld [vmem:[#allocation2 + $0x140] sm:$0xff]  ;;  %v1712_v42 = vld [vmem:[#allocation2 + $0x158] sm:$0xff] }
 0x3cd   :  { %v1639_v59 = vrot.slane %v1631_v24, 4  ;;  %v1640_v61 = vrot.slane %v1632_v47, 4  ;;  %v1600_v28 = vpop.permute.xlu1 %1599  ;;  %v2182_v22 = vpack.c.bf16 %v1713_v51, %v1709_v12  ;;  %v2210_v34 = vpack.c.bf16 %v1716_v58, %v1712_v42  ;;  %v3148_v24 = vld [vmem:[#allocation4_spill] sm:$0xff] }
 0x3ce   :  { %v1607_v15 = vsel %vm274_vm6, %v1598_v45, %v1600_v28  ;;  %v1602_v44 = vpop.permute.xlu0 %1601 }
 0x3cf   :  { %1647 = vst [vmem:[#allocation2 + $0x190] sm:$0xf0] %v1639_v59  ;;  %1648 = vst [vmem:[#allocation2 + $0x198] sm:$0xf0] %v1640_v61  ;;  %v1609_v48 = vmul.f32 %v1607_v15, %v2588_v21  ;;  %2183 = vmatpush1.bf16.msra.mxu0 %v2182_v22  ;;  %2211 = vmatprep.subr.bf16.mxu1 %v2210_v34  ;;  %v1606_v41 = vsel %vm274_vm6, %v1600_v28, %v1602_v44  ;;  %v3150_v59 = vld [vmem:[#allocation3_spill] sm:$0xff]  ;;  %v3151_v22 = vld [vmem:[#allocation5_spill] sm:$0xff] }
 0x3d0   :  { %v1610_v43 = vmul.f32 %v1606_v41, %v2597_v36  ;;  %2213 = vmatpush1.bf16.msra.mxu1 %v2212_v56 }
 0x3d1   :  { %1613 = vst [vmem:[#allocation2 + $0x180] sm:$0xf] %v1609_v48  ;;  %v1604_v19 = vpop.permute.xlu1 %1603 }
 0x3d2   :  { %1614 = vst [vmem:[#allocation2 + $0x188] sm:$0xf] %v1610_v43  ;;  %v1605_v7 = vsel %vm274_vm6, %v1602_v44, %v1604_v19  ;;  %v1608_v37 = vsel %vm274_vm6, %v1604_v19, %v1598_v45  ;;  %v1650_v4 = vpop.permute.xlu0 %1649 }
 0x3d3   :  { %v1611_v21 = vmul.f32 %v1605_v7, %v2600_v9  ;;  %v1612_v1 = vmul.f32 %v1608_v37, %v2594_v35  ;;  %v2248_v9 = vld [vmem:[%s3130_s1 + $0x28] ss:$0 sm:$0xff] }
 0x3d5   :  { %1615 = vst [vmem:[#allocation2 + $0x190] sm:$0xf] %v1611_v21  ;;  %1616 = vst [vmem:[#allocation2 + $0x198] sm:$0xf] %v1612_v1  ;;  %v1652_v27 = vpop.permute.xlu1 %1651 }
 0x3d6   :  { %v1659_v36 = vsel %vm360_vm7, %v1650_v4, %v1652_v27  ;;  %v1654_v40 = vpop.permute.xlu0 %1653 }
 0x3d7   :  { %v1661_v46 = vmul.f32 %v2247_v20, %v1659_v36  ;;  %v1658_v55 = vsel %vm360_vm7, %v1652_v27, %v1654_v40 }
 0x3d8   :  { %v1662_v35 = vmul.f32 %v2248_v9, %v1658_v55  ;;  %v1717_v5 = vld [vmem:[#allocation2 + $0x180] sm:$0xff] }
 0x3d9   :  { %1665 = vst [vmem:[#allocation2 + $0x1a0] sm:$0xf] %v1661_v46  ;;  %v1656_v13 = vpop.permute.xlu1 %1655  ;;  %v1718_v54 = vld [vmem:[#allocation2 + $0x188] sm:$0xff] }
 0x3da   :  { %1666 = vst [vmem:[#allocation2 + $0x1a8] sm:$0xf] %v1662_v35  ;;  %v1657_v29 = vsel %vm360_vm7, %v1654_v40, %v1656_v13  ;;  %v1660_v52 = vsel %vm360_vm7, %v1656_v13, %v1650_v4  ;;  %v1891_v33 = vpop.permute.xlu0 %1890 }
 0x3db   :  { %v1663_v17 = vmul.f32 %v2249_v10, %v1657_v29  ;;  %v1664_v31 = vmul.f32 %v2250_v18, %v1660_v52 }
 0x3dc   :  { %v1720_v62 = vld [vmem:[#allocation2 + $0x198] sm:$0xff]  ;;  %v1719_v32 = vld [vmem:[#allocation2 + $0x190] sm:$0xff] }
 0x3dd   :  { %1667 = vst [vmem:[#allocation2 + $0x1b0] sm:$0xf] %v1663_v17  ;;  %1668 = vst [vmem:[#allocation2 + $0x1b8] sm:$0xf] %v1664_v31 }
 0x3e0   :  { %v1721_v57 = vld [vmem:[#allocation2 + $0x1a0] sm:$0xf] }
 0x3e1   :  { %v1722_v50 = vld [vmem:[#allocation2 + $0x1a8] sm:$0xf]  ;;  %v2187_v53 = vpack.c.bf16 %v1721_v57, %v1717_v5 }
 0x3e2   :  { %v2184_v14 = vpack.c.bf16 %v1722_v50, %v1718_v54 }
 0x3e4   :  { %2186 = vmatprep.subr.msk.bf16.mxu0 %vm3095_vm13, %v2184_v14  ;;  %v1724_v26 = vld [vmem:[#allocation2 + $0x1b8] sm:$0xf]  ;;  %v1723_v16 = vld [vmem:[#allocation2 + $0x1b0] sm:$0xf] }
 0x3e5   :  { %2189 = vmatpush1.bf16.msk.msra.mxu0 %vm3095_vm13, %v2187_v53  ;;  %v2214_v3 = vpack.c.bf16 %v1724_v26, %v1720_v62  ;;  %v2217_v39 = vpack.c.bf16 %v1723_v16, %v1719_v32 }
 0x3e7   :  { %2216 = vmatprep.subr.msk.bf16.mxu1 %vm3095_vm13, %v2214_v3 }
 0x3e8   :  { %2219 = vmatpush1.bf16.msk.msra.mxu1 %vm3095_vm13, %v2217_v39  ;;  %2102 = vmatmul.mubr.msk.f32.vlgmr.msra.gmra.mrb[6].mxu0 %vm1726_vm14, %v1725_v11 }
 0x3e9   :  { %1970 = vmatprep.mubr.f32.mxu0 %v3145_v49 }
 0x3eb   :  { %2105 = vmatmul.mubr.msk.f32.vlgmr.msra.gmra.mrb[6].mxu1 %vm1726_vm14, %v1725_v11 }
 0x3ec   :  { %2041 = vmatprep.mubr.f32.mxu1 %v3145_v49 }
 0x4bb   :  { %v1808_v0 = vpop.f32.mrb[6].mxu0 }
 0x4bc   :  { %v1884_v2 = vmax.f32 %v1808_v0, 0.0  ;;  %v1810_v6 = vpop.f32.mrb[7].mxu0 }
 0x4bd   :  { %v1885_v30 = vmax.f32 %v1810_v6, 0.0 }
 0x4be   :  { %v1879_v60 = vpop.f32.mrb[6].mxu1 }
 0x4bf   :  { %v1881_v63 = vpop.f32.mrb[7].mxu1  ;;  %2106 = vmatprep.subr.msk.mxu0 %vm415_vm8, %v1885_v30  ;;  %v1886_v45 = vmax.f32 %v1879_v60, 0.0 }
 0x4c0   :  { %v1887_v38 = vmax.f32 %v1881_v63, 0.0  ;;  %2107 = vmatpush1.msk.msra.mxu0 %vm415_vm8, %v1884_v2 }
 0x4c1   :  { %2108 = vmatmul.mubr.msk.f32.vlgmr.msra.gmra.mrb[2].mxu0 %vm577_vm10, %v1891_v33 }
 0x4c2   :  { %2109 = vmatprep.subr.msk.mxu1 %vm415_vm8, %v1887_v38 }
 0x4c3   :  { %2110 = vmatpush1.msk.msra.mxu1 %vm415_vm8, %v1886_v45 }
 0x4c4   :  { %2111 = vmatmul.mubr.msk.f32.vlgmr.msra.gmra.mrb[2].mxu1 %vm577_vm10, %v1891_v33 }
 0x594   :  { %v1972_v49 = vpop.f32.mrb[2].mxu0 }
 0x595   :  { %v2052_v47 = vadd.f32 %v1972_v49, %v3148_v24  ;;  %v1974_v51 = vpop.f32.mrb[3].mxu0 }
 0x596   :  { %v2053_v12 = vadd.f32 %v1974_v51, %v3149_v23 }
 0x597   :  { %v2043_v42 = vpop.f32.mrb[2].mxu1 }
 0x598   :  { %v2060_v58 = vcombine.low %v2052_v47, %v2053_v12  ;;  %v2054_v61 = vadd.f32 %v2043_v42, %v3150_v59  ;;  %v2045_v28 = vpop.f32.mrb[3].mxu1 }
 0x599   :  { %v2055_v34 = vadd.f32 %v2045_v28, %v3151_v22 }
 0x59a   :  { %2064 = vst [vmem:[%s3134_s6] sm:$0xff] %v2060_v58 }
 0x59b   :  { %v2061_v25 = vcombine.low %v2054_v61, %v2055_v34 }
 0x59d   :  { %2065 = vst [vmem:[%s3134_s6 + $0x8] sm:$0xff] %v2061_v25 }

</bundles_post_ra>
